<compile_context>
chip_gen: v6e
topology: v6e:2x2x1
jax: 0.10.0
libtpu: 0.0.40
codegen_flags: <defaults>
</compile_context>

<pallas_src>
import functools

import jax
import jax.numpy as jnp
from jax.experimental import pallas as pl
from jax.experimental.pallas import tpu as pltpu

_MASK = -1e30  # additive-bias sentinel for non-edges (exp underflows to exact 0)


def _round_up(x, m):
    return ((x + m - 1) // m) * m


def _pick_vmem_limit():
    """~3/4 of per-core VMEM: ~96 MiB on v5e/v6e (128 MiB parts), ~48 MiB on v7x."""
    try:
        cap = pltpu.get_tpu_info().vmem_capacity_bytes
    except Exception:
        cap = 128 * 1024 * 1024
    return int(max(32 * 1024 * 1024, (cap * 3) // 4))


# ---------------------------------------------------------------------------
# Kernel 1: shared linear projection  g = act(h) @ W   (ELU optionally fused).
# ---------------------------------------------------------------------------
def _proj_kernel(h_ref, w_ref, g_ref, *, apply_elu):
    h = h_ref[...].astype(jnp.float32)
    if apply_elu:
        # ELU between the two GATv2 layers, fused into this layer's input path.
        # (exp(x)-1 rather than expm1 for guaranteed Mosaic lowering; the
        #  difference is below f32 tolerance for this forward pass.)
        h = jnp.where(h > 0.0, h, jnp.exp(h) - 1.0)
    # f32 MXU matmul kept on purpose (bf16 would risk the 5e-4 tolerance).
    g_ref[...] = jnp.dot(h, w_ref[...], preferred_element_type=jnp.float32)


# ---------------------------------------------------------------------------
# Kernel 2: GATv2 attention for one query-node tile, all heads in-body.
#   aw    [F]        (SMEM) shared attention vector (same weights for every head)
#   g     [Np, H*F]  shared projection of all nodes (values; dst rows via pl.ds)
#   g^T   [H*F, Np]  source-side projection, lane-dense
#   bias  [T, Np]    additive adjacency mask (0 on edges / -1e30 off edges)
#   attn  [H, T, F]  output: per-head aggregation
#   att   [T, Np]    output (output_att only): mean-over-heads attention matrix
# ---------------------------------------------------------------------------
def _attn_kernel(aw_ref, g_ref, g_srcT_ref, bias_ref, attn_ref, *att_refs,
                 neg_slope, n_heads, n_hidden, tile_i, output_att):
    row0 = pl.multiple_of(pl.program_id(0) * tile_i, tile_i)
    g_dst = g_ref[pl.ds(row0, tile_i), :]          # [T, HF] query rows, no extra DMA
    g_srcT = g_srcT_ref[...]                       # [HF, Np]
    g_vals = g_ref[...]                            # [Np, HF]
    bias = bias_ref[...]                           # [T, Np]

    # Per-feature scalars hoisted out of the head loop: leaky_relu and the
    # attention weight fold into a single select inside the hot loop.
    w_pos = [aw_ref[f] for f in range(n_hidden)]
    w_neg = [w * neg_slope for w in w_pos]

    att_acc = None
    for h in range(n_heads):
        # Scores, fused per feature; everything stays lane-dense [T, Np].  The
        # accumulator starts from the additive mask bias (no compare/selects).
        e = bias
        for f0 in range(n_hidden):
            f = h * n_hidden + f0
            s = g_srcT[f:f + 1, :] + g_dst[:, f:f + 1]              # [T, Np]
            e = e + s * jnp.where(s >= 0.0, w_pos[f0], w_neg[f0])

        # Softmax over the source (lane) axis.  exp underflows to exact 0 for
        # the -1e30 bias, so no second mask select is needed; fully-masked rows
        # (including padding) reproduce torch.nan_to_num(softmax(...)) == 0.
        e_max = jnp.max(e, axis=-1, keepdims=True)                  # [T, 1]
        e_max = jnp.where(e_max > -1e20, e_max, 0.0)                # isolated rows
        p = jnp.exp(e - e_max)
        denom = jnp.sum(p, axis=-1, keepdims=True)
        inv = pl.reciprocal(jnp.where(denom > 0.0, denom, 1.0), approx=False)
        a = p * inv                                                 # [T, Np]

        if output_att:
            att_acc = a if att_acc is None else att_acc + a

        # Aggregation on the MXU: attn[h, i, f] = sum_j a[i, j] * g[j, h, f].
        attn_ref[h] = jnp.dot(a, g_vals[:, h * n_hidden:(h + 1) * n_hidden],
                              preferred_element_type=jnp.float32)

    if output_att:
        att_refs[0][...] = att_acc * (1.0 / n_heads)


# ---------------------------------------------------------------------------
# One GraphAttentionV2Layer forward (share_weights=True, eval mode).
# ---------------------------------------------------------------------------
def gat_layer(h, w, aw, bias2d, *, n_heads, n_hidden, neg_slope=0.2,
              apply_elu=False, output_att=False, vmem_limit_bytes=None):
    """Returns (attn [N, H*F], att [N, N] or None, g [N, H*F])."""
    n_nodes, in_feat = h.shape
    hf = n_heads * n_hidden
    if vmem_limit_bytes is None:
        vmem_limit_bytes = _pick_vmem_limit()

    # Attention query tiling: cap at 128 rows, but always aim for >=2 tiles so
    # both v7x TensorCores get work even on the single-head output layer.
    if n_nodes >= 256:
        tile_i = 128
    else:
        tile_i = max(8, _round_up((n_nodes + 1) // 2, 8))
    n_pad = _round_up(n_nodes, tile_i)
    n_i_tiles = n_pad // tile_i
    if n_pad != n_nodes:
        h = jnp.pad(h, ((0, n_pad - n_nodes), (0, 0)))
        bias2d = jnp.pad(bias2d, ((0, n_pad - n_nodes), (0, n_pad - n_nodes)),
                         constant_values=_MASK)

    # Projection tiling decoupled from the attention tile (memory-bound stage;
    # bigger row tiles get closer to the HBM roofline).
    if n_pad <= 512:
        tile_p = n_pad
    elif n_pad % 512 == 0:
        tile_p = 512
    elif n_pad % 256 == 0:
        tile_p = 256
    else:
        tile_p = 128                       # n_pad is a multiple of 128 here
    n_p_tiles = n_pad // tile_p

    # --- 1) single shared projection (share_weights=True); ELU fused ----------
    g = pl.pallas_call(
        functools.partial(_proj_kernel, apply_elu=apply_elu),
        out_shape=jax.ShapeDtypeStruct((n_pad, hf), jnp.float32),
        grid=(n_p_tiles,),
        in_specs=[pl.BlockSpec((tile_p, in_feat), lambda i: (i, 0)),
                  pl.BlockSpec((in_feat, hf), lambda i: (0, 0))],
        out_specs=pl.BlockSpec((tile_p, hf), lambda i: (i, 0)),
        compiler_params=pltpu.CompilerParams(
            dimension_semantics=("parallel",),
            vmem_limit_bytes=vmem_limit_bytes),
    )(h.astype(jnp.float32), w.astype(jnp.float32))

    # Lane-dense source-side view [HF, Np].  Tiny O(N*HF) XLA transpose; the
    # head-major permute of the previous revision is gone since heads are now
    # folded inside the attention kernel.
    g_srcT = g.T

    # --- 2) attention kernel; grid = (query tiles,), heads handled in-body ----
    # TODO(synk): for very large graphs add a source-node (j) grid axis with an
    # online softmax so VMEM stays bounded independently of N (matters most on
    # v7x's 64 MiB per-core VMEM); the full-row layout below is the right choice
    # for small/medium N.
    out_shape = [jax.ShapeDtypeStruct((n_heads, n_pad, n_hidden), jnp.float32)]
    out_specs = [pl.BlockSpec((n_heads, tile_i, n_hidden), lambda i: (0, i, 0))]
    if output_att:
        out_shape.append(jax.ShapeDtypeStruct((n_pad, n_pad), jnp.float32))
        out_specs.append(pl.BlockSpec((tile_i, n_pad), lambda i: (i, 0)))

    in_specs = [
        pl.BlockSpec(memory_space=pltpu.MemorySpace.SMEM),   # aw [F]
        pl.BlockSpec((n_pad, hf), lambda i: (0, 0)),         # g (values + dst rows)
        pl.BlockSpec((hf, n_pad), lambda i: (0, 0)),         # g^T (source term)
        pl.BlockSpec((tile_i, n_pad), lambda i: (i, 0)),     # additive mask bias
    ]

    outs = pl.pallas_call(
        functools.partial(_attn_kernel, neg_slope=neg_slope, n_heads=n_heads,
                          n_hidden=n_hidden, tile_i=tile_i, output_att=output_att),
        out_shape=tuple(out_shape),
        grid=(n_i_tiles,),
        in_specs=in_specs,
        out_specs=tuple(out_specs),
        compiler_params=pltpu.CompilerParams(
            dimension_semantics=("parallel",),
            vmem_limit_bytes=vmem_limit_bytes),
    )(aw.reshape(-1).astype(jnp.float32), g, g_srcT, bias2d)

    # [H, N, F] -> [N, H*F] (tiny O(N*HF) layout plumbing; the concat order
    # matches torch's reshape of [N, H, F]).
    attn = outs[0][:, :n_nodes, :].transpose(1, 0, 2).reshape(n_nodes, hf)
    g_out = g[:n_nodes]
    att = outs[1][:n_nodes, :n_nodes] if output_att else None
    return attn, att, g_out


# ---------------------------------------------------------------------------
# GATv2 model forward (glue in plain JAX; hot path inside the Pallas kernels).
# ---------------------------------------------------------------------------
def gatv2_forward(x, adj, params, *, n_heads, n_hidden, n_classes):
    f1 = n_hidden // n_heads
    adj2d = adj[:, :, 0] if adj.ndim == 3 else adj
    # Additive attention bias (0 on edges, -1e30 elsewhere), built once and
    # shared by both layers: replaces the in-kernel mask compare + selects.
    bias2d = jnp.where(adj2d != 0, 0.0, _MASK).astype(jnp.float32)
    vmem_limit_bytes = _pick_vmem_limit()

    # TODO(synk): dropout is treated as identity (eval mode); training-mode
    # dropout would require pltpu.prng_* masking inside the kernels.

    # Layer 1: is_concat=True, share_weights=True -> only attn is consumed.
    attn1, _, _ = gat_layer(x, params["w1"], params["a1"], bias2d,
                            n_heads=n_heads, n_hidden=f1,
                            apply_elu=False, output_att=False,
                            vmem_limit_bytes=vmem_limit_bytes)
    h1 = attn1                                   # already [N, H*F] (concat)

    # Layer 2: is_concat=False, n_heads=1, output_att=True; the inter-layer ELU
    # is fused into this layer's projection kernel.
    attn2, att, g2 = gat_layer(h1, params["w2"], params["a2"], bias2d,
                               n_heads=1, n_hidden=n_classes,
                               apply_elu=True, output_att=True,
                               vmem_limit_bytes=vmem_limit_bytes)
    x_out = attn2                                # H=1: mean over heads == the head
    # g_sum[i, j, :] = g2[j, :] + g2[i, :]: one XLA broadcast-add writes it
    # directly in the reference [N, N, HF] layout (1x HBM pass vs in-kernel
    # store + O(N^2*HF) transpose == 3x the traffic in the previous revision).
    att_ft = g2[None, :, :] + g2[:, None, :]
    return x_out, att, att_ft


# ---------------------------------------------------------------------------
# Pure-JAX reference (mirrors the PyTorch module) for a correctness check.
# ---------------------------------------------------------------------------
def _ref_layer(h, w, aw, adj2d, n_heads, n_hidden, apply_elu):
    if apply_elu:
        h = jnp.where(h > 0.0, h, jnp.exp(h) - 1.0)
    n = h.shape[0]
    g = (h @ w).reshape(n, n_heads, n_hidden)
    g_sum = g[None, :, :, :] + g[:, None, :, :]                # [i, j, h, f]
    act = jnp.where(g_sum >= 0.0, g_sum, 0.2 * g_sum)
    e = jnp.einsum("ijhf,f->ijh", act, aw.reshape(-1))
    e = jnp.where(adj2d[:, :, None] != 0.0, e, -jnp.inf)
    a = jnp.nan_to_num(jax.nn.softmax(e, axis=1))
    attn = jnp.einsum("ijh,jhf->ihf", a, g)
    return attn, a, g_sum.reshape(n, n, n_heads * n_hidden)


def _ref_model(x, adj, params, n_heads, n_hidden, n_classes):
    n = x.shape[0]
    f1 = n_hidden // n_heads
    adj2d = adj[:, :, 0] if adj.ndim == 3 else adj
    attn1, _, _ = _ref_layer(x, params["w1"], params["a1"], adj2d, n_heads, f1, False)
    h1 = attn1.reshape(n, n_heads * f1)
    attn2, a2, gsum2 = _ref_layer(h1, params["w2"], params["a2"], adj2d, 1, n_classes, True)
    return jnp.mean(attn2, axis=1), jnp.mean(a2, axis=-1), gsum2


# ---------------------------------------------------------------------------
if __name__ == "__main__":
    jax.config.update("jax_default_matmul_precision", "highest")

    # Small, forward-consistent shapes.
    n_nodes, in_features = 16, 8
    n_hidden, n_heads, n_classes = 16, 4, 8
    f1 = n_hidden // n_heads

    key = jax.random.PRNGKey(0)
    k_x, k_adj, k_w1, k_a1, k_w2, k_a2 = jax.random.split(key, 6)

    x = jax.random.normal(k_x, (n_nodes, in_features), dtype=jnp.float32)

    # Adjacency: random edges + self loops, [N, N, 1] float (nonzero == edge).
    adj = (jax.random.uniform(k_adj, (n_nodes, n_nodes)) < 0.4).astype(jnp.float32)
    adj = jnp.maximum(adj, jnp.eye(n_nodes, dtype=jnp.float32))[:, :, None]

    def lin_init(k, fan_in, fan_out):
        bound = 1.0 / float(fan_in) ** 0.5
        return jax.random.uniform(k, (fan_in, fan_out), jnp.float32, -bound, bound)

    params = {
        "w1": lin_init(k_w1, in_features, n_heads * f1),   # layer-1 shared linear [Fin, H*F]
        "a1": lin_init(k_a1, f1, 1)[:, 0],                 # attn vector [F]
        "w2": lin_init(k_w2, n_hidden, n_classes),         # layer-2 shared linear
        "a2": lin_init(k_a2, n_classes, 1)[:, 0],          # attn vector [n_classes]
    }

    fwd = jax.jit(functools.partial(gatv2_forward, n_heads=n_heads,
                                    n_hidden=n_hidden, n_classes=n_classes))
    out, att, att_ft = fwd(x, adj, params)
    jax.block_until_ready((out, att, att_ft))

    # Correctness check against the pure-JAX reference.
    r_out, r_att, r_att_ft = _ref_model(x, adj, params, n_heads, n_hidden, n_classes)
    assert jnp.allclose(out, r_out, rtol=5e-4, atol=5e-4), "x output mismatch"
    assert jnp.allclose(att, r_att, rtol=5e-4, atol=5e-4), "attention mismatch"
    assert jnp.allclose(att_ft, r_att_ft, rtol=5e-4, atol=5e-4), "g_sum mismatch"

    print("KERNEL_OK")
</pallas_src>

<mosaic_0001>
module attributes {stable_mosaic.version = 11 : i64} {
  func.func @_proj_kernel(%arg0: i32, %arg1: memref<16x8xf32, #tpu.memory_space<vmem>>, %arg2: memref<8x16xf32, #tpu.memory_space<vmem>>, %arg3: memref<16x16xf32, #tpu.memory_space<vmem>>) attributes {dimension_semantics = [#tpu.dimension_semantics<parallel>], iteration_bounds = array<i64: 1>, scalar_prefetch = 0 : i64, scratch_operands = 0 : i64, tpu.core_type = #tpu.core_type<tc>, window_params = [{transform_indices = @transform_0, window_bounds = array<i64: 16, 8>}, {pipeline_mode = #tpu.pipeline_mode<synchronous>, transform_indices = @transform_1, window_bounds = array<i64: 8, 16>}, {transform_indices = @transform_2, window_bounds = array<i64: 16, 16>}]} {
    %c0 = arith.constant 0 : index
    %c0_0 = arith.constant 0 : index
    %0 = vector.load %arg1[%c0, %c0_0] : memref<16x8xf32, #tpu.memory_space<vmem>>, vector<16x8xf32>
    %c0_1 = arith.constant 0 : index
    %c0_2 = arith.constant 0 : index
    %1 = vector.load %arg2[%c0_1, %c0_2] : memref<8x16xf32, #tpu.memory_space<vmem>>, vector<8x16xf32>
    %cst = arith.constant dense<0.000000e+00> : vector<16x16xf32>
    %2 = tpu.matmul %0, %1, %cst {dimension_numbers = #tpu.dot_dimension_numbers<[1], [0], [0], [1], [0, 0, 1, 1], [], []>, precision = #tpu.contract_precision<fp32>} : vector<16x8xf32>, vector<8x16xf32>, vector<16x16xf32> -> vector<16x16xf32>
    %c0_3 = arith.constant 0 : index
    %c0_4 = arith.constant 0 : index
    %3 = vector.load %arg3[%c0_3, %c0_4] : memref<16x16xf32, #tpu.memory_space<vmem>>, vector<16x16xf32>
    tpu.vector_store %arg3[%c0_3, %c0_4], %2 {strides = array<i32>} : memref<16x16xf32, #tpu.memory_space<vmem>>, vector<16x16xf32>,
    return
  }
  func.func @transform_0(%arg0: i32) -> (i32, i32) {
    %c0_i32 = arith.constant 0 : i32
    %c0_i32_0 = arith.constant 0 : i32
    return %arg0, %c0_i32 : i32, i32
  }
  func.func @transform_1(%arg0: i32) -> (i32, i32) {
    %c0_i32 = arith.constant 0 : i32
    %c0_i32_0 = arith.constant 0 : i32
    %c0_i32_1 = arith.constant 0 : i32
    return %c0_i32, %c0_i32_0 : i32, i32
  }
  func.func @transform_2(%arg0: i32) -> (i32, i32) {
    %c0_i32 = arith.constant 0 : i32
    %c0_i32_0 = arith.constant 0 : i32
    return %arg0, %c0_i32 : i32, i32
  }
}

module attributes {stable_mosaic.version = 11 : i64} {
  func.func @_proj_kernel(%arg0: i32, %arg1: memref<16x16xf32, #tpu.memory_space<vmem>>, %arg2: memref<16x8xf32, #tpu.memory_space<vmem>>, %arg3: memref<16x8xf32, #tpu.memory_space<vmem>>) attributes {dimension_semantics = [#tpu.dimension_semantics<parallel>], iteration_bounds = array<i64: 1>, scalar_prefetch = 0 : i64, scratch_operands = 0 : i64, tpu.core_type = #tpu.core_type<tc>, window_params = [{transform_indices = @transform_0, window_bounds = array<i64: 16, 16>}, {pipeline_mode = #tpu.pipeline_mode<synchronous>, transform_indices = @transform_1, window_bounds = array<i64: 16, 8>}, {transform_indices = @transform_2, window_bounds = array<i64: 16, 8>}]} {
    %c0 = arith.constant 0 : index
    %c0_0 = arith.constant 0 : index
    %0 = vector.load %arg1[%c0, %c0_0] : memref<16x16xf32, #tpu.memory_space<vmem>>, vector<16x16xf32>
    %cst = arith.constant 0.000000e+00 : f32
    %1 = vector.broadcast %cst : f32 to vector<16x16xf32>
    %2 = arith.cmpf ogt, %0, %1 : vector<16x16xf32>
    %3 = math.exp %0 : vector<16x16xf32>
    %cst_1 = arith.constant 1.000000e+00 : f32
    %4 = vector.broadcast %cst_1 : f32 to vector<16x16xf32>
    %5 = arith.subf %3, %4 : vector<16x16xf32>
    %6 = arith.select %2, %0, %5 : vector<16x16xi1>, vector<16x16xf32>
    %c0_2 = arith.constant 0 : index
    %c0_3 = arith.constant 0 : index
    %7 = vector.load %arg2[%c0_2, %c0_3] : memref<16x8xf32, #tpu.memory_space<vmem>>, vector<16x8xf32>
    %cst_4 = arith.constant dense<0.000000e+00> : vector<16x8xf32>
    %8 = tpu.matmul %6, %7, %cst_4 {dimension_numbers = #tpu.dot_dimension_numbers<[1], [0], [0], [1], [0, 0, 1, 1], [], []>, precision = #tpu.contract_precision<fp32>} : vector<16x16xf32>, vector<16x8xf32>, vector<16x8xf32> -> vector<16x8xf32>
    %c0_5 = arith.constant 0 : index
    %c0_6 = arith.constant 0 : index
    %9 = vector.load %arg3[%c0_5, %c0_6] : memref<16x8xf32, #tpu.memory_space<vmem>>, vector<16x8xf32>
    tpu.vector_store %arg3[%c0_5, %c0_6], %8 {strides = array<i32>} : memref<16x8xf32, #tpu.memory_space<vmem>>, vector<16x8xf32>,
    return
  }
  func.func @transform_0(%arg0: i32) -> (i32, i32) {
    %c0_i32 = arith.constant 0 : i32
    %c0_i32_0 = arith.constant 0 : i32
    return %arg0, %c0_i32 : i32, i32
  }
  func.func @transform_1(%arg0: i32) -> (i32, i32) {
    %c0_i32 = arith.constant 0 : i32
    %c0_i32_0 = arith.constant 0 : i32
    %c0_i32_1 = arith.constant 0 : i32
    return %c0_i32, %c0_i32_0 : i32, i32
  }
  func.func @transform_2(%arg0: i32) -> (i32, i32) {
    %c0_i32 = arith.constant 0 : i32
    %c0_i32_0 = arith.constant 0 : i32
    return %arg0, %c0_i32 : i32, i32
  }
}

module attributes {stable_mosaic.version = 11 : i64} {
  func.func @_attn_kernel(%arg0: i32, %arg1: memref<4xf32, #tpu.memory_space<smem>>, %arg2: memref<16x16xf32, #tpu.memory_space<vmem>>, %arg3: memref<16x16xf32, #tpu.memory_space<vmem>>, %arg4: memref<8x16xf32, #tpu.memory_space<vmem>>, %arg5: memref<4x8x4xf32, #tpu.memory_space<vmem>>) attributes {dimension_semantics = [#tpu.dimension_semantics<parallel>], iteration_bounds = array<i64: 2>, scalar_prefetch = 0 : i64, scratch_operands = 0 : i64, tpu.core_type = #tpu.core_type<tc>, window_params = [{transform_indices = @transform_0, window_bounds = array<i64: 4>}, {pipeline_mode = #tpu.pipeline_mode<synchronous>, transform_indices = @transform_1, window_bounds = array<i64: 16, 16>}, {pipeline_mode = #tpu.pipeline_mode<synchronous>, transform_indices = @transform_2, window_bounds = array<i64: 16, 16>}, {transform_indices = @transform_3, window_bounds = array<i64: 8, 16>}, {transform_indices = @transform_4, window_bounds = array<i64: 4, 8, 4>}]} {
    %c8_i32 = arith.constant 8 : i32
    %0 = arith.muli %arg0, %c8_i32 : i32
    %1 = tpu.assume_multiple %0, 8 : i32
    %2 = arith.index_cast %1 : i32 to index
    %c0 = arith.constant 0 : index
    %3 = vector.load %arg2[%2, %c0] : memref<16x16xf32, #tpu.memory_space<vmem>>, vector<8x16xf32>
    %c0_0 = arith.constant 0 : index
    %c0_1 = arith.constant 0 : index
    %4 = vector.load %arg3[%c0_0, %c0_1] : memref<16x16xf32, #tpu.memory_space<vmem>>, vector<16x16xf32>
    %c0_2 = arith.constant 0 : index
    %c0_3 = arith.constant 0 : index
    %5 = vector.load %arg2[%c0_2, %c0_3] : memref<16x16xf32, #tpu.memory_space<vmem>>, vector<16x16xf32>
    %c0_4 = arith.constant 0 : index
    %c0_5 = arith.constant 0 : index
    %6 = vector.load %arg4[%c0_4, %c0_5] : memref<8x16xf32, #tpu.memory_space<vmem>>, vector<8x16xf32>
    %c0_6 = arith.constant 0 : index
    %7 = memref.load %arg1[%c0_6] : memref<4xf32, #tpu.memory_space<smem>>
    %c1 = arith.constant 1 : index
    %8 = memref.load %arg1[%c1] : memref<4xf32, #tpu.memory_space<smem>>
    %c2 = arith.constant 2 : index
    %9 = memref.load %arg1[%c2] : memref<4xf32, #tpu.memory_space<smem>>
    %c3 = arith.constant 3 : index
    %10 = memref.load %arg1[%c3] : memref<4xf32, #tpu.memory_space<smem>>
    %cst = arith.constant 2.000000e-01 : f32
    %11 = arith.mulf %7, %cst : f32
    %cst_7 = arith.constant 2.000000e-01 : f32
    %12 = arith.mulf %8, %cst_7 : f32
    %cst_8 = arith.constant 2.000000e-01 : f32
    %13 = arith.mulf %9, %cst_8 : f32
    %cst_9 = arith.constant 2.000000e-01 : f32
    %14 = arith.mulf %10, %cst_9 : f32
    %15 = vector.extract_strided_slice %4 {offsets = [0, 0], sizes = [1, 16], strides = [1, 1]} : vector<16x16xf32> to vector<1x16xf32>
    %16 = vector.extract_strided_slice %3 {offsets = [0, 0], sizes = [8, 1], strides = [1, 1]} : vector<8x16xf32> to vector<8x1xf32>
    %17 = vector.broadcast %15 : vector<1x16xf32> to vector<8x16xf32>
    %18 = vector.broadcast %16 : vector<8x1xf32> to vector<8x16xf32>
    %19 = arith.addf %17, %18 : vector<8x16xf32>
    %cst_10 = arith.constant 0.000000e+00 : f32
    %20 = vector.broadcast %cst_10 : f32 to vector<8x16xf32>
    %21 = arith.cmpf oge, %19, %20 : vector<8x16xf32>
    %22 = vector.broadcast %7 : f32 to vector<8x16xf32>
    %23 = vector.broadcast %11 : f32 to vector<8x16xf32>
    %24 = arith.select %21, %22, %23 : vector<8x16xi1>, vector<8x16xf32>
    %25 = arith.mulf %19, %24 : vector<8x16xf32>
    %26 = arith.addf %6, %25 : vector<8x16xf32>
    %27 = vector.extract_strided_slice %4 {offsets = [1, 0], sizes = [1, 16], strides = [1, 1]} : vector<16x16xf32> to vector<1x16xf32>
    %28 = vector.extract_strided_slice %3 {offsets = [0, 1], sizes = [8, 1], strides = [1, 1]} : vector<8x16xf32> to vector<8x1xf32>
    %29 = vector.broadcast %27 : vector<1x16xf32> to vector<8x16xf32>
    %30 = vector.broadcast %28 : vector<8x1xf32> to vector<8x16xf32>
    %31 = arith.addf %29, %30 : vector<8x16xf32>
    %cst_11 = arith.constant 0.000000e+00 : f32
    %32 = vector.broadcast %cst_11 : f32 to vector<8x16xf32>
    %33 = arith.cmpf oge, %31, %32 : vector<8x16xf32>
    %34 = vector.broadcast %8 : f32 to vector<8x16xf32>
    %35 = vector.broadcast %12 : f32 to vector<8x16xf32>
    %36 = arith.select %33, %34, %35 : vector<8x16xi1>, vector<8x16xf32>
    %37 = arith.mulf %31, %36 : vector<8x16xf32>
    %38 = arith.addf %26, %37 : vector<8x16xf32>
    %39 = vector.extract_strided_slice %4 {offsets = [2, 0], sizes = [1, 16], strides = [1, 1]} : vector<16x16xf32> to vector<1x16xf32>
    %40 = vector.extract_strided_slice %3 {offsets = [0, 2], sizes = [8, 1], strides = [1, 1]} : vector<8x16xf32> to vector<8x1xf32>
    %41 = vector.broadcast %39 : vector<1x16xf32> to vector<8x16xf32>
    %42 = vector.broadcast %40 : vector<8x1xf32> to vector<8x16xf32>
    %43 = arith.addf %41, %42 : vector<8x16xf32>
    %cst_12 = arith.constant 0.000000e+00 : f32
    %44 = vector.broadcast %cst_12 : f32 to vector<8x16xf32>
    %45 = arith.cmpf oge, %43, %44 : vector<8x16xf32>
    %46 = vector.broadcast %9 : f32 to vector<8x16xf32>
    %47 = vector.broadcast %13 : f32 to vector<8x16xf32>
    %48 = arith.select %45, %46, %47 : vector<8x16xi1>, vector<8x16xf32>
    %49 = arith.mulf %43, %48 : vector<8x16xf32>
    %50 = arith.addf %38, %49 : vector<8x16xf32>
    %51 = vector.extract_strided_slice %4 {offsets = [3, 0], sizes = [1, 16], strides = [1, 1]} : vector<16x16xf32> to vector<1x16xf32>
    %52 = vector.extract_strided_slice %3 {offsets = [0, 3], sizes = [8, 1], strides = [1, 1]} : vector<8x16xf32> to vector<8x1xf32>
    %53 = vector.broadcast %51 : vector<1x16xf32> to vector<8x16xf32>
    %54 = vector.broadcast %52 : vector<8x1xf32> to vector<8x16xf32>
    %55 = arith.addf %53, %54 : vector<8x16xf32>
    %cst_13 = arith.constant 0.000000e+00 : f32
    %56 = vector.broadcast %cst_13 : f32 to vector<8x16xf32>
    %57 = arith.cmpf oge, %55, %56 : vector<8x16xf32>
    %58 = vector.broadcast %10 : f32 to vector<8x16xf32>
    %59 = vector.broadcast %14 : f32 to vector<8x16xf32>
    %60 = arith.select %57, %58, %59 : vector<8x16xi1>, vector<8x16xf32>
    %61 = arith.mulf %55, %60 : vector<8x16xf32>
    %62 = arith.addf %50, %61 : vector<8x16xf32>
    %cst_14 = arith.constant dense<0xFF800000> : vector<8xf32>
    %63 = vector.multi_reduction <maximumf>, %62, %cst_14 [1] : vector<8x16xf32> to vector<8xf32>
    %64 = vector.shape_cast %63 : vector<8xf32> to vector<8x1xf32>
    %cst_15 = arith.constant -1.000000e+20 : f32
    %65 = vector.broadcast %cst_15 : f32 to vector<8x1xf32>
    %66 = arith.cmpf ogt, %64, %65 : vector<8x1xf32>
    %cst_16 = arith.constant 0.000000e+00 : f32
    %67 = vector.broadcast %cst_16 : f32 to vector<8x1xf32>
    %68 = arith.select %66, %64, %67 : vector<8x1xi1>, vector<8x1xf32>
    %69 = vector.broadcast %68 : vector<8x1xf32> to vector<8x16xf32>
    %70 = arith.subf %62, %69 : vector<8x16xf32>
    %71 = math.exp %70 : vector<8x16xf32>
    %cst_17 = arith.constant dense<0.000000e+00> : vector<8xf32>
    %72 = vector.multi_reduction <add>, %71, %cst_17 [1] : vector<8x16xf32> to vector<8xf32>
    %73 = vector.shape_cast %72 : vector<8xf32> to vector<8x1xf32>
    %cst_18 = arith.constant 0.000000e+00 : f32
    %74 = vector.broadcast %cst_18 : f32 to vector<8x1xf32>
    %75 = arith.cmpf ogt, %73, %74 : vector<8x1xf32>
    %cst_19 = arith.constant 1.000000e+00 : f32
    %76 = vector.broadcast %cst_19 : f32 to vector<8x1xf32>
    %77 = arith.select %75, %73, %76 : vector<8x1xi1>, vector<8x1xf32>
    %78 = tpu.reciprocal %77 : vector<8x1xf32> -> vector<8x1xf32>
    %79 = vector.broadcast %78 : vector<8x1xf32> to vector<8x16xf32>
    %80 = arith.mulf %71, %79 : vector<8x16xf32>
    %81 = vector.extract_strided_slice %5 {offsets = [0, 0], sizes = [16, 4], strides = [1, 1]} : vector<16x16xf32> to vector<16x4xf32>
    %cst_20 = arith.constant dense<0.000000e+00> : vector<8x4xf32>
    %82 = tpu.matmul %80, %81, %cst_20 {dimension_numbers = #tpu.dot_dimension_numbers<[1], [0], [0], [1], [0, 0, 1, 1], [], []>, precision = #tpu.contract_precision<fp32>} : vector<8x16xf32>, vector<16x4xf32>, vector<8x4xf32> -> vector<8x4xf32>
    %c0_21 = arith.constant 0 : index
    %c0_22 = arith.constant 0 : index
    %c0_23 = arith.constant 0 : index
    %83 = vector.load %arg5[%c0_21, %c0_22, %c0_23] : memref<4x8x4xf32, #tpu.memory_space<vmem>>, vector<1x8x4xf32>
    %84 = vector.shape_cast %83 : vector<1x8x4xf32> to vector<8x4xf32>
    %85 = vector.shape_cast %82 : vector<8x4xf32> to vector<1x8x4xf32>
    tpu.vector_store %arg5[%c0_21, %c0_22, %c0_23], %85 {strides = array<i32>} : memref<4x8x4xf32, #tpu.memory_space<vmem>>, vector<1x8x4xf32>,
    %86 = vector.extract_strided_slice %4 {offsets = [4, 0], sizes = [1, 16], strides = [1, 1]} : vector<16x16xf32> to vector<1x16xf32>
    %87 = vector.extract_strided_slice %3 {offsets = [0, 4], sizes = [8, 1], strides = [1, 1]} : vector<8x16xf32> to vector<8x1xf32>
    %88 = vector.broadcast %86 : vector<1x16xf32> to vector<8x16xf32>
    %89 = vector.broadcast %87 : vector<8x1xf32> to vector<8x16xf32>
    %90 = arith.addf %88, %89 : vector<8x16xf32>
    %cst_24 = arith.constant 0.000000e+00 : f32
    %91 = vector.broadcast %cst_24 : f32 to vector<8x16xf32>
    %92 = arith.cmpf oge, %90, %91 : vector<8x16xf32>
    %93 = vector.broadcast %7 : f32 to vector<8x16xf32>
    %94 = vector.broadcast %11 : f32 to vector<8x16xf32>
    %95 = arith.select %92, %93, %94 : vector<8x16xi1>, vector<8x16xf32>
    %96 = arith.mulf %90, %95 : vector<8x16xf32>
    %97 = arith.addf %6, %96 : vector<8x16xf32>
    %98 = vector.extract_strided_slice %4 {offsets = [5, 0], sizes = [1, 16], strides = [1, 1]} : vector<16x16xf32> to vector<1x16xf32>
    %99 = vector.extract_strided_slice %3 {offsets = [0, 5], sizes = [8, 1], strides = [1, 1]} : vector<8x16xf32> to vector<8x1xf32>
    %100 = vector.broadcast %98 : vector<1x16xf32> to vector<8x16xf32>
    %101 = vector.broadcast %99 : vector<8x1xf32> to vector<8x16xf32>
    %102 = arith.addf %100, %101 : vector<8x16xf32>
    %cst_25 = arith.constant 0.000000e+00 : f32
    %103 = vector.broadcast %cst_25 : f32 to vector<8x16xf32>
    %104 = arith.cmpf oge, %102, %103 : vector<8x16xf32>
    %105 = vector.broadcast %8 : f32 to vector<8x16xf32>
    %106 = vector.broadcast %12 : f32 to vector<8x16xf32>
    %107 = arith.select %104, %105, %106 : vector<8x16xi1>, vector<8x16xf32>
    %108 = arith.mulf %102, %107 : vector<8x16xf32>
    %109 = arith.addf %97, %108 : vector<8x16xf32>
    %110 = vector.extract_strided_slice %4 {offsets = [6, 0], sizes = [1, 16], strides = [1, 1]} : vector<16x16xf32> to vector<1x16xf32>
    %111 = vector.extract_strided_slice %3 {offsets = [0, 6], sizes = [8, 1], strides = [1, 1]} : vector<8x16xf32> to vector<8x1xf32>
    %112 = vector.broadcast %110 : vector<1x16xf32> to vector<8x16xf32>
    %113 = vector.broadcast %111 : vector<8x1xf32> to vector<8x16xf32>
    %114 = arith.addf %112, %113 : vector<8x16xf32>
    %cst_26 = arith.constant 0.000000e+00 : f32
    %115 = vector.broadcast %cst_26 : f32 to vector<8x16xf32>
    %116 = arith.cmpf oge, %114, %115 : vector<8x16xf32>
    %117 = vector.broadcast %9 : f32 to vector<8x16xf32>
    %118 = vector.broadcast %13 : f32 to vector<8x16xf32>
    %119 = arith.select %116, %117, %118 : vector<8x16xi1>, vector<8x16xf32>
    %120 = arith.mulf %114, %119 : vector<8x16xf32>
    %121 = arith.addf %109, %120 : vector<8x16xf32>
    %122 = vector.extract_strided_slice %4 {offsets = [7, 0], sizes = [1, 16], strides = [1, 1]} : vector<16x16xf32> to vector<1x16xf32>
    %123 = vector.extract_strided_slice %3 {offsets = [0, 7], sizes = [8, 1], strides = [1, 1]} : vector<8x16xf32> to vector<8x1xf32>
    %124 = vector.broadcast %122 : vector<1x16xf32> to vector<8x16xf32>
    %125 = vector.broadcast %123 : vector<8x1xf32> to vector<8x16xf32>
    %126 = arith.addf %124, %125 : vector<8x16xf32>
    %cst_27 = arith.constant 0.000000e+00 : f32
    %127 = vector.broadcast %cst_27 : f32 to vector<8x16xf32>
    %128 = arith.cmpf oge, %126, %127 : vector<8x16xf32>
    %129 = vector.broadcast %10 : f32 to vector<8x16xf32>
    %130 = vector.broadcast %14 : f32 to vector<8x16xf32>
    %131 = arith.select %128, %129, %130 : vector<8x16xi1>, vector<8x16xf32>
    %132 = arith.mulf %126, %131 : vector<8x16xf32>
    %133 = arith.addf %121, %132 : vector<8x16xf32>
    %cst_28 = arith.constant dense<0xFF800000> : vector<8xf32>
    %134 = vector.multi_reduction <maximumf>, %133, %cst_28 [1] : vector<8x16xf32> to vector<8xf32>
    %135 = vector.shape_cast %134 : vector<8xf32> to vector<8x1xf32>
    %cst_29 = arith.constant -1.000000e+20 : f32
    %136 = vector.broadcast %cst_29 : f32 to vector<8x1xf32>
    %137 = arith.cmpf ogt, %135, %136 : vector<8x1xf32>
    %cst_30 = arith.constant 0.000000e+00 : f32
    %138 = vector.broadcast %cst_30 : f32 to vector<8x1xf32>
    %139 = arith.select %137, %135, %138 : vector<8x1xi1>, vector<8x1xf32>
    %140 = vector.broadcast %139 : vector<8x1xf32> to vector<8x16xf32>
    %141 = arith.subf %133, %140 : vector<8x16xf32>
    %142 = math.exp %141 : vector<8x16xf32>
    %cst_31 = arith.constant dense<0.000000e+00> : vector<8xf32>
    %143 = vector.multi_reduction <add>, %142, %cst_31 [1] : vector<8x16xf32> to vector<8xf32>
    %144 = vector.shape_cast %143 : vector<8xf32> to vector<8x1xf32>
    %cst_32 = arith.constant 0.000000e+00 : f32
    %145 = vector.broadcast %cst_32 : f32 to vector<8x1xf32>
    %146 = arith.cmpf ogt, %144, %145 : vector<8x1xf32>
    %cst_33 = arith.constant 1.000000e+00 : f32
    %147 = vector.broadcast %cst_33 : f32 to vector<8x1xf32>
    %148 = arith.select %146, %144, %147 : vector<8x1xi1>, vector<8x1xf32>
    %149 = tpu.reciprocal %148 : vector<8x1xf32> -> vector<8x1xf32>
    %150 = vector.broadcast %149 : vector<8x1xf32> to vector<8x16xf32>
    %151 = arith.mulf %142, %150 : vector<8x16xf32>
    %152 = vector.extract_strided_slice %5 {offsets = [0, 4], sizes = [16, 4], strides = [1, 1]} : vector<16x16xf32> to vector<16x4xf32>
    %cst_34 = arith.constant dense<0.000000e+00> : vector<8x4xf32>
    %153 = tpu.matmul %151, %152, %cst_34 {dimension_numbers = #tpu.dot_dimension_numbers<[1], [0], [0], [1], [0, 0, 1, 1], [], []>, precision = #tpu.contract_precision<fp32>} : vector<8x16xf32>, vector<16x4xf32>, vector<8x4xf32> -> vector<8x4xf32>
    %c1_35 = arith.constant 1 : index
    %c0_36 = arith.constant 0 : index
    %c0_37 = arith.constant 0 : index
    %154 = vector.load %arg5[%c1_35, %c0_36, %c0_37] : memref<4x8x4xf32, #tpu.memory_space<vmem>>, vector<1x8x4xf32>
    %155 = vector.shape_cast %154 : vector<1x8x4xf32> to vector<8x4xf32>
    %156 = vector.shape_cast %153 : vector<8x4xf32> to vector<1x8x4xf32>
    tpu.vector_store %arg5[%c1_35, %c0_36, %c0_37], %156 {strides = array<i32>} : memref<4x8x4xf32, #tpu.memory_space<vmem>>, vector<1x8x4xf32>,
    %157 = vector.extract_strided_slice %4 {offsets = [8, 0], sizes = [1, 16], strides = [1, 1]} : vector<16x16xf32> to vector<1x16xf32>
    %158 = vector.extract_strided_slice %3 {offsets = [0, 8], sizes = [8, 1], strides = [1, 1]} : vector<8x16xf32> to vector<8x1xf32>
    %159 = vector.broadcast %157 : vector<1x16xf32> to vector<8x16xf32>
    %160 = vector.broadcast %158 : vector<8x1xf32> to vector<8x16xf32>
    %161 = arith.addf %159, %160 : vector<8x16xf32>
    %cst_38 = arith.constant 0.000000e+00 : f32
    %162 = vector.broadcast %cst_38 : f32 to vector<8x16xf32>
    %163 = arith.cmpf oge, %161, %162 : vector<8x16xf32>
    %164 = vector.broadcast %7 : f32 to vector<8x16xf32>
    %165 = vector.broadcast %11 : f32 to vector<8x16xf32>
    %166 = arith.select %163, %164, %165 : vector<8x16xi1>, vector<8x16xf32>
    %167 = arith.mulf %161, %166 : vector<8x16xf32>
    %168 = arith.addf %6, %167 : vector<8x16xf32>
    %169 = vector.extract_strided_slice %4 {offsets = [9, 0], sizes = [1, 16], strides = [1, 1]} : vector<16x16xf32> to vector<1x16xf32>
    %170 = vector.extract_strided_slice %3 {offsets = [0, 9], sizes = [8, 1], strides = [1, 1]} : vector<8x16xf32> to vector<8x1xf32>
    %171 = vector.broadcast %169 : vector<1x16xf32> to vector<8x16xf32>
    %172 = vector.broadcast %170 : vector<8x1xf32> to vector<8x16xf32>
    %173 = arith.addf %171, %172 : vector<8x16xf32>
    %cst_39 = arith.constant 0.000000e+00 : f32
    %174 = vector.broadcast %cst_39 : f32 to vector<8x16xf32>
    %175 = arith.cmpf oge, %173, %174 : vector<8x16xf32>
    %176 = vector.broadcast %8 : f32 to vector<8x16xf32>
    %177 = vector.broadcast %12 : f32 to vector<8x16xf32>
    %178 = arith.select %175, %176, %177 : vector<8x16xi1>, vector<8x16xf32>
    %179 = arith.mulf %173, %178 : vector<8x16xf32>
    %180 = arith.addf %168, %179 : vector<8x16xf32>
    %181 = vector.extract_strided_slice %4 {offsets = [10, 0], sizes = [1, 16], strides = [1, 1]} : vector<16x16xf32> to vector<1x16xf32>
    %182 = vector.extract_strided_slice %3 {offsets = [0, 10], sizes = [8, 1], strides = [1, 1]} : vector<8x16xf32> to vector<8x1xf32>
    %183 = vector.broadcast %181 : vector<1x16xf32> to vector<8x16xf32>
    %184 = vector.broadcast %182 : vector<8x1xf32> to vector<8x16xf32>
    %185 = arith.addf %183, %184 : vector<8x16xf32>
    %cst_40 = arith.constant 0.000000e+00 : f32
    %186 = vector.broadcast %cst_40 : f32 to vector<8x16xf32>
    %187 = arith.cmpf oge, %185, %186 : vector<8x16xf32>
    %188 = vector.broadcast %9 : f32 to vector<8x16xf32>
    %189 = vector.broadcast %13 : f32 to vector<8x16xf32>
    %190 = arith.select %187, %188, %189 : vector<8x16xi1>, vector<8x16xf32>
    %191 = arith.mulf %185, %190 : vector<8x16xf32>
    %192 = arith.addf %180, %191 : vector<8x16xf32>
    %193 = vector.extract_strided_slice %4 {offsets = [11, 0], sizes = [1, 16], strides = [1, 1]} : vector<16x16xf32> to vector<1x16xf32>
    %194 = vector.extract_strided_slice %3 {offsets = [0, 11], sizes = [8, 1], strides = [1, 1]} : vector<8x16xf32> to vector<8x1xf32>
    %195 = vector.broadcast %193 : vector<1x16xf32> to vector<8x16xf32>
    %196 = vector.broadcast %194 : vector<8x1xf32> to vector<8x16xf32>
    %197 = arith.addf %195, %196 : vector<8x16xf32>
    %cst_41 = arith.constant 0.000000e+00 : f32
    %198 = vector.broadcast %cst_41 : f32 to vector<8x16xf32>
    %199 = arith.cmpf oge, %197, %198 : vector<8x16xf32>
    %200 = vector.broadcast %10 : f32 to vector<8x16xf32>
    %201 = vector.broadcast %14 : f32 to vector<8x16xf32>
    %202 = arith.select %199, %200, %201 : vector<8x16xi1>, vector<8x16xf32>
    %203 = arith.mulf %197, %202 : vector<8x16xf32>
    %204 = arith.addf %192, %203 : vector<8x16xf32>
    %cst_42 = arith.constant dense<0xFF800000> : vector<8xf32>
    %205 = vector.multi_reduction <maximumf>, %204, %cst_42 [1] : vector<8x16xf32> to vector<8xf32>
    %206 = vector.shape_cast %205 : vector<8xf32> to vector<8x1xf32>
    %cst_43 = arith.constant -1.000000e+20 : f32
    %207 = vector.broadcast %cst_43 : f32 to vector<8x1xf32>
    %208 = arith.cmpf ogt, %206, %207 : vector<8x1xf32>
    %cst_44 = arith.constant 0.000000e+00 : f32
    %209 = vector.broadcast %cst_44 : f32 to vector<8x1xf32>
    %210 = arith.select %208, %206, %209 : vector<8x1xi1>, vector<8x1xf32>
    %211 = vector.broadcast %210 : vector<8x1xf32> to vector<8x16xf32>
    %212 = arith.subf %204, %211 : vector<8x16xf32>
    %213 = math.exp %212 : vector<8x16xf32>
    %cst_45 = arith.constant dense<0.000000e+00> : vector<8xf32>
    %214 = vector.multi_reduction <add>, %213, %cst_45 [1] : vector<8x16xf32> to vector<8xf32>
    %215 = vector.shape_cast %214 : vector<8xf32> to vector<8x1xf32>
    %cst_46 = arith.constant 0.000000e+00 : f32
    %216 = vector.broadcast %cst_46 : f32 to vector<8x1xf32>
    %217 = arith.cmpf ogt, %215, %216 : vector<8x1xf32>
    %cst_47 = arith.constant 1.000000e+00 : f32
    %218 = vector.broadcast %cst_47 : f32 to vector<8x1xf32>
    %219 = arith.select %217, %215, %218 : vector<8x1xi1>, vector<8x1xf32>
    %220 = tpu.reciprocal %219 : vector<8x1xf32> -> vector<8x1xf32>
    %221 = vector.broadcast %220 : vector<8x1xf32> to vector<8x16xf32>
    %222 = arith.mulf %213, %221 : vector<8x16xf32>
    %223 = vector.extract_strided_slice %5 {offsets = [0, 8], sizes = [16, 4], strides = [1, 1]} : vector<16x16xf32> to vector<16x4xf32>
    %cst_48 = arith.constant dense<0.000000e+00> : vector<8x4xf32>
    %224 = tpu.matmul %222, %223, %cst_48 {dimension_numbers = #tpu.dot_dimension_numbers<[1], [0], [0], [1], [0, 0, 1, 1], [], []>, precision = #tpu.contract_precision<fp32>} : vector<8x16xf32>, vector<16x4xf32>, vector<8x4xf32> -> vector<8x4xf32>
    %c2_49 = arith.constant 2 : index
    %c0_50 = arith.constant 0 : index
    %c0_51 = arith.constant 0 : index
    %225 = vector.load %arg5[%c2_49, %c0_50, %c0_51] : memref<4x8x4xf32, #tpu.memory_space<vmem>>, vector<1x8x4xf32>
    %226 = vector.shape_cast %225 : vector<1x8x4xf32> to vector<8x4xf32>
    %227 = vector.shape_cast %224 : vector<8x4xf32> to vector<1x8x4xf32>
    tpu.vector_store %arg5[%c2_49, %c0_50, %c0_51], %227 {strides = array<i32>} : memref<4x8x4xf32, #tpu.memory_space<vmem>>, vector<1x8x4xf32>,
    %228 = vector.extract_strided_slice %4 {offsets = [12, 0], sizes = [1, 16], strides = [1, 1]} : vector<16x16xf32> to vector<1x16xf32>
    %229 = vector.extract_strided_slice %3 {offsets = [0, 12], sizes = [8, 1], strides = [1, 1]} : vector<8x16xf32> to vector<8x1xf32>
    %230 = vector.broadcast %228 : vector<1x16xf32> to vector<8x16xf32>
    %231 = vector.broadcast %229 : vector<8x1xf32> to vector<8x16xf32>
    %232 = arith.addf %230, %231 : vector<8x16xf32>
    %cst_52 = arith.constant 0.000000e+00 : f32
    %233 = vector.broadcast %cst_52 : f32 to vector<8x16xf32>
    %234 = arith.cmpf oge, %232, %233 : vector<8x16xf32>
    %235 = vector.broadcast %7 : f32 to vector<8x16xf32>
    %236 = vector.broadcast %11 : f32 to vector<8x16xf32>
    %237 = arith.select %234, %235, %236 : vector<8x16xi1>, vector<8x16xf32>
    %238 = arith.mulf %232, %237 : vector<8x16xf32>
    %239 = arith.addf %6, %238 : vector<8x16xf32>
    %240 = vector.extract_strided_slice %4 {offsets = [13, 0], sizes = [1, 16], strides = [1, 1]} : vector<16x16xf32> to vector<1x16xf32>
    %241 = vector.extract_strided_slice %3 {offsets = [0, 13], sizes = [8, 1], strides = [1, 1]} : vector<8x16xf32> to vector<8x1xf32>
    %242 = vector.broadcast %240 : vector<1x16xf32> to vector<8x16xf32>
    %243 = vector.broadcast %241 : vector<8x1xf32> to vector<8x16xf32>
    %244 = arith.addf %242, %243 : vector<8x16xf32>
    %cst_53 = arith.constant 0.000000e+00 : f32
    %245 = vector.broadcast %cst_53 : f32 to vector<8x16xf32>
    %246 = arith.cmpf oge, %244, %245 : vector<8x16xf32>
    %247 = vector.broadcast %8 : f32 to vector<8x16xf32>
    %248 = vector.broadcast %12 : f32 to vector<8x16xf32>
    %249 = arith.select %246, %247, %248 : vector<8x16xi1>, vector<8x16xf32>
    %250 = arith.mulf %244, %249 : vector<8x16xf32>
    %251 = arith.addf %239, %250 : vector<8x16xf32>
    %252 = vector.extract_strided_slice %4 {offsets = [14, 0], sizes = [1, 16], strides = [1, 1]} : vector<16x16xf32> to vector<1x16xf32>
    %253 = vector.extract_strided_slice %3 {offsets = [0, 14], sizes = [8, 1], strides = [1, 1]} : vector<8x16xf32> to vector<8x1xf32>
    %254 = vector.broadcast %252 : vector<1x16xf32> to vector<8x16xf32>
    %255 = vector.broadcast %253 : vector<8x1xf32> to vector<8x16xf32>
    %256 = arith.addf %254, %255 : vector<8x16xf32>
    %cst_54 = arith.constant 0.000000e+00 : f32
    %257 = vector.broadcast %cst_54 : f32 to vector<8x16xf32>
    %258 = arith.cmpf oge, %256, %257 : vector<8x16xf32>
    %259 = vector.broadcast %9 : f32 to vector<8x16xf32>
    %260 = vector.broadcast %13 : f32 to vector<8x16xf32>
    %261 = arith.select %258, %259, %260 : vector<8x16xi1>, vector<8x16xf32>
    %262 = arith.mulf %256, %261 : vector<8x16xf32>
    %263 = arith.addf %251, %262 : vector<8x16xf32>
    %264 = vector.extract_strided_slice %4 {offsets = [15, 0], sizes = [1, 16], strides = [1, 1]} : vector<16x16xf32> to vector<1x16xf32>
    %265 = vector.extract_strided_slice %3 {offsets = [0, 15], sizes = [8, 1], strides = [1, 1]} : vector<8x16xf32> to vector<8x1xf32>
    %266 = vector.broadcast %264 : vector<1x16xf32> to vector<8x16xf32>
    %267 = vector.broadcast %265 : vector<8x1xf32> to vector<8x16xf32>
    %268 = arith.addf %266, %267 : vector<8x16xf32>
    %cst_55 = arith.constant 0.000000e+00 : f32
    %269 = vector.broadcast %cst_55 : f32 to vector<8x16xf32>
    %270 = arith.cmpf oge, %268, %269 : vector<8x16xf32>
    %271 = vector.broadcast %10 : f32 to vector<8x16xf32>
    %272 = vector.broadcast %14 : f32 to vector<8x16xf32>
    %273 = arith.select %270, %271, %272 : vector<8x16xi1>, vector<8x16xf32>
    %274 = arith.mulf %268, %273 : vector<8x16xf32>
    %275 = arith.addf %263, %274 : vector<8x16xf32>
    %cst_56 = arith.constant dense<0xFF800000> : vector<8xf32>
    %276 = vector.multi_reduction <maximumf>, %275, %cst_56 [1] : vector<8x16xf32> to vector<8xf32>
    %277 = vector.shape_cast %276 : vector<8xf32> to vector<8x1xf32>
    %cst_57 = arith.constant -1.000000e+20 : f32
    %278 = vector.broadcast %cst_57 : f32 to vector<8x1xf32>
    %279 = arith.cmpf ogt, %277, %278 : vector<8x1xf32>
    %cst_58 = arith.constant 0.000000e+00 : f32
    %280 = vector.broadcast %cst_58 : f32 to vector<8x1xf32>
    %281 = arith.select %279, %277, %280 : vector<8x1xi1>, vector<8x1xf32>
    %282 = vector.broadcast %281 : vector<8x1xf32> to vector<8x16xf32>
    %283 = arith.subf %275, %282 : vector<8x16xf32>
    %284 = math.exp %283 : vector<8x16xf32>
    %cst_59 = arith.constant dense<0.000000e+00> : vector<8xf32>
    %285 = vector.multi_reduction <add>, %284, %cst_59 [1] : vector<8x16xf32> to vector<8xf32>
    %286 = vector.shape_cast %285 : vector<8xf32> to vector<8x1xf32>
    %cst_60 = arith.constant 0.000000e+00 : f32
    %287 = vector.broadcast %cst_60 : f32 to vector<8x1xf32>
    %288 = arith.cmpf ogt, %286, %287 : vector<8x1xf32>
    %cst_61 = arith.constant 1.000000e+00 : f32
    %289 = vector.broadcast %cst_61 : f32 to vector<8x1xf32>
    %290 = arith.select %288, %286, %289 : vector<8x1xi1>, vector<8x1xf32>
    %291 = tpu.reciprocal %290 : vector<8x1xf32> -> vector<8x1xf32>
    %292 = vector.broadcast %291 : vector<8x1xf32> to vector<8x16xf32>
    %293 = arith.mulf %284, %292 : vector<8x16xf32>
    %294 = vector.extract_strided_slice %5 {offsets = [0, 12], sizes = [16, 4], strides = [1, 1]} : vector<16x16xf32> to vector<16x4xf32>
    %cst_62 = arith.constant dense<0.000000e+00> : vector<8x4xf32>
    %295 = tpu.matmul %293, %294, %cst_62 {dimension_numbers = #tpu.dot_dimension_numbers<[1], [0], [0], [1], [0, 0, 1, 1], [], []>, precision = #tpu.contract_precision<fp32>} : vector<8x16xf32>, vector<16x4xf32>, vector<8x4xf32> -> vector<8x4xf32>
    %c3_63 = arith.constant 3 : index
    %c0_64 = arith.constant 0 : index
    %c0_65 = arith.constant 0 : index
    %296 = vector.load %arg5[%c3_63, %c0_64, %c0_65] : memref<4x8x4xf32, #tpu.memory_space<vmem>>, vector<1x8x4xf32>
    %297 = vector.shape_cast %296 : vector<1x8x4xf32> to vector<8x4xf32>
    %298 = vector.shape_cast %295 : vector<8x4xf32> to vector<1x8x4xf32>
    tpu.vector_store %arg5[%c3_63, %c0_64, %c0_65], %298 {strides = array<i32>} : memref<4x8x4xf32, #tpu.memory_space<vmem>>, vector<1x8x4xf32>,
    return
  }
  func.func @transform_0(%arg0: i32) -> i32 {
    %c0_i32 = arith.constant 0 : i32
    %c0_i32_0 = arith.constant 0 : i32
    return %c0_i32 : i32
  }
  func.func @transform_1(%arg0: i32) -> (i32, i32) {
    %c0_i32 = arith.constant 0 : i32
    %c0_i32_0 = arith.constant 0 : i32
    %c0_i32_1 = arith.constant 0 : i32
    return %c0_i32, %c0_i32_0 : i32, i32
  }
  func.func @transform_2(%arg0: i32) -> (i32, i32) {
    %c0_i32 = arith.constant 0 : i32
    %c0_i32_0 = arith.constant 0 : i32
    %c0_i32_1 = arith.constant 0 : i32
    return %c0_i32, %c0_i32_0 : i32, i32
  }
  func.func @transform_3(%arg0: i32) -> (i32, i32) {
    %c0_i32 = arith.constant 0 : i32
    %c0_i32_0 = arith.constant 0 : i32
    return %arg0, %c0_i32 : i32, i32
  }
  func.func @transform_4(%arg0: i32) -> (i32, i32, i32) {
    %c0_i32 = arith.constant 0 : i32
    %c0_i32_0 = arith.constant 0 : i32
    %c0_i32_1 = arith.constant 0 : i32
    return %c0_i32, %arg0, %c0_i32_0 : i32, i32, i32
  }
}

module attributes {stable_mosaic.version = 11 : i64} {
  func.func @_attn_kernel(%arg0: i32, %arg1: memref<8xf32, #tpu.memory_space<smem>>, %arg2: memref<16x8xf32, #tpu.memory_space<vmem>>, %arg3: memref<8x16xf32, #tpu.memory_space<vmem>>, %arg4: memref<8x16xf32, #tpu.memory_space<vmem>>, %arg5: memref<1x8x8xf32, #tpu.memory_space<vmem>>, %arg6: memref<8x16xf32, #tpu.memory_space<vmem>>) attributes {dimension_semantics = [#tpu.dimension_semantics<parallel>], iteration_bounds = array<i64: 2>, scalar_prefetch = 0 : i64, scratch_operands = 0 : i64, tpu.core_type = #tpu.core_type<tc>, window_params = [{transform_indices = @transform_0, window_bounds = array<i64: 8>}, {pipeline_mode = #tpu.pipeline_mode<synchronous>, transform_indices = @transform_1, window_bounds = array<i64: 16, 8>}, {pipeline_mode = #tpu.pipeline_mode<synchronous>, transform_indices = @transform_2, window_bounds = array<i64: 8, 16>}, {transform_indices = @transform_3, window_bounds = array<i64: 8, 16>}, {transform_indices = @transform_4, window_bounds = array<i64: 1, 8, 8>}, {transform_indices = @transform_5, window_bounds = array<i64: 8, 16>}]} {
    %c8_i32 = arith.constant 8 : i32
    %0 = arith.muli %arg0, %c8_i32 : i32
    %1 = tpu.assume_multiple %0, 8 : i32
    %2 = arith.index_cast %1 : i32 to index
    %c0 = arith.constant 0 : index
    %3 = vector.load %arg2[%2, %c0] : memref<16x8xf32, #tpu.memory_space<vmem>>, vector<8x8xf32>
    %c0_0 = arith.constant 0 : index
    %c0_1 = arith.constant 0 : index
    %4 = vector.load %arg3[%c0_0, %c0_1] : memref<8x16xf32, #tpu.memory_space<vmem>>, vector<8x16xf32>
    %c0_2 = arith.constant 0 : index
    %c0_3 = arith.constant 0 : index
    %5 = vector.load %arg2[%c0_2, %c0_3] : memref<16x8xf32, #tpu.memory_space<vmem>>, vector<16x8xf32>
    %c0_4 = arith.constant 0 : index
    %c0_5 = arith.constant 0 : index
    %6 = vector.load %arg4[%c0_4, %c0_5] : memref<8x16xf32, #tpu.memory_space<vmem>>, vector<8x16xf32>
    %c0_6 = arith.constant 0 : index
    %7 = memref.load %arg1[%c0_6] : memref<8xf32, #tpu.memory_space<smem>>
    %c1 = arith.constant 1 : index
    %8 = memref.load %arg1[%c1] : memref<8xf32, #tpu.memory_space<smem>>
    %c2 = arith.constant 2 : index
    %9 = memref.load %arg1[%c2] : memref<8xf32, #tpu.memory_space<smem>>
    %c3 = arith.constant 3 : index
    %10 = memref.load %arg1[%c3] : memref<8xf32, #tpu.memory_space<smem>>
    %c4 = arith.constant 4 : index
    %11 = memref.load %arg1[%c4] : memref<8xf32, #tpu.memory_space<smem>>
    %c5 = arith.constant 5 : index
    %12 = memref.load %arg1[%c5] : memref<8xf32, #tpu.memory_space<smem>>
    %c6 = arith.constant 6 : index
    %13 = memref.load %arg1[%c6] : memref<8xf32, #tpu.memory_space<smem>>
    %c7 = arith.constant 7 : index
    %14 = memref.load %arg1[%c7] : memref<8xf32, #tpu.memory_space<smem>>
    %cst = arith.constant 2.000000e-01 : f32
    %15 = arith.mulf %7, %cst : f32
    %cst_7 = arith.constant 2.000000e-01 : f32
    %16 = arith.mulf %8, %cst_7 : f32
    %cst_8 = arith.constant 2.000000e-01 : f32
    %17 = arith.mulf %9, %cst_8 : f32
    %cst_9 = arith.constant 2.000000e-01 : f32
    %18 = arith.mulf %10, %cst_9 : f32
    %cst_10 = arith.constant 2.000000e-01 : f32
    %19 = arith.mulf %11, %cst_10 : f32
    %cst_11 = arith.constant 2.000000e-01 : f32
    %20 = arith.mulf %12, %cst_11 : f32
    %cst_12 = arith.constant 2.000000e-01 : f32
    %21 = arith.mulf %13, %cst_12 : f32
    %cst_13 = arith.constant 2.000000e-01 : f32
    %22 = arith.mulf %14, %cst_13 : f32
    %23 = vector.extract_strided_slice %4 {offsets = [0, 0], sizes = [1, 16], strides = [1, 1]} : vector<8x16xf32> to vector<1x16xf32>
    %24 = vector.extract_strided_slice %3 {offsets = [0, 0], sizes = [8, 1], strides = [1, 1]} : vector<8x8xf32> to vector<8x1xf32>
    %25 = vector.broadcast %23 : vector<1x16xf32> to vector<8x16xf32>
    %26 = vector.broadcast %24 : vector<8x1xf32> to vector<8x16xf32>
    %27 = arith.addf %25, %26 : vector<8x16xf32>
    %cst_14 = arith.constant 0.000000e+00 : f32
    %28 = vector.broadcast %cst_14 : f32 to vector<8x16xf32>
    %29 = arith.cmpf oge, %27, %28 : vector<8x16xf32>
    %30 = vector.broadcast %7 : f32 to vector<8x16xf32>
    %31 = vector.broadcast %15 : f32 to vector<8x16xf32>
    %32 = arith.select %29, %30, %31 : vector<8x16xi1>, vector<8x16xf32>
    %33 = arith.mulf %27, %32 : vector<8x16xf32>
    %34 = arith.addf %6, %33 : vector<8x16xf32>
    %35 = vector.extract_strided_slice %4 {offsets = [1, 0], sizes = [1, 16], strides = [1, 1]} : vector<8x16xf32> to vector<1x16xf32>
    %36 = vector.extract_strided_slice %3 {offsets = [0, 1], sizes = [8, 1], strides = [1, 1]} : vector<8x8xf32> to vector<8x1xf32>
    %37 = vector.broadcast %35 : vector<1x16xf32> to vector<8x16xf32>
    %38 = vector.broadcast %36 : vector<8x1xf32> to vector<8x16xf32>
    %39 = arith.addf %37, %38 : vector<8x16xf32>
    %cst_15 = arith.constant 0.000000e+00 : f32
    %40 = vector.broadcast %cst_15 : f32 to vector<8x16xf32>
    %41 = arith.cmpf oge, %39, %40 : vector<8x16xf32>
    %42 = vector.broadcast %8 : f32 to vector<8x16xf32>
    %43 = vector.broadcast %16 : f32 to vector<8x16xf32>
    %44 = arith.select %41, %42, %43 : vector<8x16xi1>, vector<8x16xf32>
    %45 = arith.mulf %39, %44 : vector<8x16xf32>
    %46 = arith.addf %34, %45 : vector<8x16xf32>
    %47 = vector.extract_strided_slice %4 {offsets = [2, 0], sizes = [1, 16], strides = [1, 1]} : vector<8x16xf32> to vector<1x16xf32>
    %48 = vector.extract_strided_slice %3 {offsets = [0, 2], sizes = [8, 1], strides = [1, 1]} : vector<8x8xf32> to vector<8x1xf32>
    %49 = vector.broadcast %47 : vector<1x16xf32> to vector<8x16xf32>
    %50 = vector.broadcast %48 : vector<8x1xf32> to vector<8x16xf32>
    %51 = arith.addf %49, %50 : vector<8x16xf32>
    %cst_16 = arith.constant 0.000000e+00 : f32
    %52 = vector.broadcast %cst_16 : f32 to vector<8x16xf32>
    %53 = arith.cmpf oge, %51, %52 : vector<8x16xf32>
    %54 = vector.broadcast %9 : f32 to vector<8x16xf32>
    %55 = vector.broadcast %17 : f32 to vector<8x16xf32>
    %56 = arith.select %53, %54, %55 : vector<8x16xi1>, vector<8x16xf32>
    %57 = arith.mulf %51, %56 : vector<8x16xf32>
    %58 = arith.addf %46, %57 : vector<8x16xf32>
    %59 = vector.extract_strided_slice %4 {offsets = [3, 0], sizes = [1, 16], strides = [1, 1]} : vector<8x16xf32> to vector<1x16xf32>
    %60 = vector.extract_strided_slice %3 {offsets = [0, 3], sizes = [8, 1], strides = [1, 1]} : vector<8x8xf32> to vector<8x1xf32>
    %61 = vector.broadcast %59 : vector<1x16xf32> to vector<8x16xf32>
    %62 = vector.broadcast %60 : vector<8x1xf32> to vector<8x16xf32>
    %63 = arith.addf %61, %62 : vector<8x16xf32>
    %cst_17 = arith.constant 0.000000e+00 : f32
    %64 = vector.broadcast %cst_17 : f32 to vector<8x16xf32>
    %65 = arith.cmpf oge, %63, %64 : vector<8x16xf32>
    %66 = vector.broadcast %10 : f32 to vector<8x16xf32>
    %67 = vector.broadcast %18 : f32 to vector<8x16xf32>
    %68 = arith.select %65, %66, %67 : vector<8x16xi1>, vector<8x16xf32>
    %69 = arith.mulf %63, %68 : vector<8x16xf32>
    %70 = arith.addf %58, %69 : vector<8x16xf32>
    %71 = vector.extract_strided_slice %4 {offsets = [4, 0], sizes = [1, 16], strides = [1, 1]} : vector<8x16xf32> to vector<1x16xf32>
    %72 = vector.extract_strided_slice %3 {offsets = [0, 4], sizes = [8, 1], strides = [1, 1]} : vector<8x8xf32> to vector<8x1xf32>
    %73 = vector.broadcast %71 : vector<1x16xf32> to vector<8x16xf32>
    %74 = vector.broadcast %72 : vector<8x1xf32> to vector<8x16xf32>
    %75 = arith.addf %73, %74 : vector<8x16xf32>
    %cst_18 = arith.constant 0.000000e+00 : f32
    %76 = vector.broadcast %cst_18 : f32 to vector<8x16xf32>
    %77 = arith.cmpf oge, %75, %76 : vector<8x16xf32>
    %78 = vector.broadcast %11 : f32 to vector<8x16xf32>
    %79 = vector.broadcast %19 : f32 to vector<8x16xf32>
    %80 = arith.select %77, %78, %79 : vector<8x16xi1>, vector<8x16xf32>
    %81 = arith.mulf %75, %80 : vector<8x16xf32>
    %82 = arith.addf %70, %81 : vector<8x16xf32>
    %83 = vector.extract_strided_slice %4 {offsets = [5, 0], sizes = [1, 16], strides = [1, 1]} : vector<8x16xf32> to vector<1x16xf32>
    %84 = vector.extract_strided_slice %3 {offsets = [0, 5], sizes = [8, 1], strides = [1, 1]} : vector<8x8xf32> to vector<8x1xf32>
    %85 = vector.broadcast %83 : vector<1x16xf32> to vector<8x16xf32>
    %86 = vector.broadcast %84 : vector<8x1xf32> to vector<8x16xf32>
    %87 = arith.addf %85, %86 : vector<8x16xf32>
    %cst_19 = arith.constant 0.000000e+00 : f32
    %88 = vector.broadcast %cst_19 : f32 to vector<8x16xf32>
    %89 = arith.cmpf oge, %87, %88 : vector<8x16xf32>
    %90 = vector.broadcast %12 : f32 to vector<8x16xf32>
    %91 = vector.broadcast %20 : f32 to vector<8x16xf32>
    %92 = arith.select %89, %90, %91 : vector<8x16xi1>, vector<8x16xf32>
    %93 = arith.mulf %87, %92 : vector<8x16xf32>
    %94 = arith.addf %82, %93 : vector<8x16xf32>
    %95 = vector.extract_strided_slice %4 {offsets = [6, 0], sizes = [1, 16], strides = [1, 1]} : vector<8x16xf32> to vector<1x16xf32>
    %96 = vector.extract_strided_slice %3 {offsets = [0, 6], sizes = [8, 1], strides = [1, 1]} : vector<8x8xf32> to vector<8x1xf32>
    %97 = vector.broadcast %95 : vector<1x16xf32> to vector<8x16xf32>
    %98 = vector.broadcast %96 : vector<8x1xf32> to vector<8x16xf32>
    %99 = arith.addf %97, %98 : vector<8x16xf32>
    %cst_20 = arith.constant 0.000000e+00 : f32
    %100 = vector.broadcast %cst_20 : f32 to vector<8x16xf32>
    %101 = arith.cmpf oge, %99, %100 : vector<8x16xf32>
    %102 = vector.broadcast %13 : f32 to vector<8x16xf32>
    %103 = vector.broadcast %21 : f32 to vector<8x16xf32>
    %104 = arith.select %101, %102, %103 : vector<8x16xi1>, vector<8x16xf32>
    %105 = arith.mulf %99, %104 : vector<8x16xf32>
    %106 = arith.addf %94, %105 : vector<8x16xf32>
    %107 = vector.extract_strided_slice %4 {offsets = [7, 0], sizes = [1, 16], strides = [1, 1]} : vector<8x16xf32> to vector<1x16xf32>
    %108 = vector.extract_strided_slice %3 {offsets = [0, 7], sizes = [8, 1], strides = [1, 1]} : vector<8x8xf32> to vector<8x1xf32>
    %109 = vector.broadcast %107 : vector<1x16xf32> to vector<8x16xf32>
    %110 = vector.broadcast %108 : vector<8x1xf32> to vector<8x16xf32>
    %111 = arith.addf %109, %110 : vector<8x16xf32>
    %cst_21 = arith.constant 0.000000e+00 : f32
    %112 = vector.broadcast %cst_21 : f32 to vector<8x16xf32>
    %113 = arith.cmpf oge, %111, %112 : vector<8x16xf32>
    %114 = vector.broadcast %14 : f32 to vector<8x16xf32>
    %115 = vector.broadcast %22 : f32 to vector<8x16xf32>
    %116 = arith.select %113, %114, %115 : vector<8x16xi1>, vector<8x16xf32>
    %117 = arith.mulf %111, %116 : vector<8x16xf32>
    %118 = arith.addf %106, %117 : vector<8x16xf32>
    %cst_22 = arith.constant dense<0xFF800000> : vector<8xf32>
    %119 = vector.multi_reduction <maximumf>, %118, %cst_22 [1] : vector<8x16xf32> to vector<8xf32>
    %120 = vector.shape_cast %119 : vector<8xf32> to vector<8x1xf32>
    %cst_23 = arith.constant -1.000000e+20 : f32
    %121 = vector.broadcast %cst_23 : f32 to vector<8x1xf32>
    %122 = arith.cmpf ogt, %120, %121 : vector<8x1xf32>
    %cst_24 = arith.constant 0.000000e+00 : f32
    %123 = vector.broadcast %cst_24 : f32 to vector<8x1xf32>
    %124 = arith.select %122, %120, %123 : vector<8x1xi1>, vector<8x1xf32>
    %125 = vector.broadcast %124 : vector<8x1xf32> to vector<8x16xf32>
    %126 = arith.subf %118, %125 : vector<8x16xf32>
    %127 = math.exp %126 : vector<8x16xf32>
    %cst_25 = arith.constant dense<0.000000e+00> : vector<8xf32>
    %128 = vector.multi_reduction <add>, %127, %cst_25 [1] : vector<8x16xf32> to vector<8xf32>
    %129 = vector.shape_cast %128 : vector<8xf32> to vector<8x1xf32>
    %cst_26 = arith.constant 0.000000e+00 : f32
    %130 = vector.broadcast %cst_26 : f32 to vector<8x1xf32>
    %131 = arith.cmpf ogt, %129, %130 : vector<8x1xf32>
    %cst_27 = arith.constant 1.000000e+00 : f32
    %132 = vector.broadcast %cst_27 : f32 to vector<8x1xf32>
    %133 = arith.select %131, %129, %132 : vector<8x1xi1>, vector<8x1xf32>
    %134 = tpu.reciprocal %133 : vector<8x1xf32> -> vector<8x1xf32>
    %135 = vector.broadcast %134 : vector<8x1xf32> to vector<8x16xf32>
    %136 = arith.mulf %127, %135 : vector<8x16xf32>
    %cst_28 = arith.constant dense<0.000000e+00> : vector<8x8xf32>
    %137 = tpu.matmul %136, %5, %cst_28 {dimension_numbers = #tpu.dot_dimension_numbers<[1], [0], [0], [1], [0, 0, 1, 1], [], []>, precision = #tpu.contract_precision<fp32>} : vector<8x16xf32>, vector<16x8xf32>, vector<8x8xf32> -> vector<8x8xf32>
    %c0_29 = arith.constant 0 : index
    %c0_30 = arith.constant 0 : index
    %c0_31 = arith.constant 0 : index
    %138 = vector.load %arg5[%c0_29, %c0_30, %c0_31] : memref<1x8x8xf32, #tpu.memory_space<vmem>>, vector<1x8x8xf32>
    %139 = vector.shape_cast %138 : vector<1x8x8xf32> to vector<8x8xf32>
    %140 = vector.shape_cast %137 : vector<8x8xf32> to vector<1x8x8xf32>
    tpu.vector_store %arg5[%c0_29, %c0_30, %c0_31], %140 {strides = array<i32>} : memref<1x8x8xf32, #tpu.memory_space<vmem>>, vector<1x8x8xf32>,
    %cst_32 = arith.constant 1.000000e+00 : f32
    %141 = vector.broadcast %cst_32 : f32 to vector<8x16xf32>
    %142 = arith.mulf %136, %141 : vector<8x16xf32>
    %c0_33 = arith.constant 0 : index
    %c0_34 = arith.constant 0 : index
    %143 = vector.load %arg6[%c0_33, %c0_34] : memref<8x16xf32, #tpu.memory_space<vmem>>, vector<8x16xf32>
    tpu.vector_store %arg6[%c0_33, %c0_34], %142 {strides = array<i32>} : memref<8x16xf32, #tpu.memory_space<vmem>>, vector<8x16xf32>,
    return
  }
  func.func @transform_0(%arg0: i32) -> i32 {
    %c0_i32 = arith.constant 0 : i32
    %c0_i32_0 = arith.constant 0 : i32
    return %c0_i32 : i32
  }
  func.func @transform_1(%arg0: i32) -> (i32, i32) {
    %c0_i32 = arith.constant 0 : i32
    %c0_i32_0 = arith.constant 0 : i32
    %c0_i32_1 = arith.constant 0 : i32
    return %c0_i32, %c0_i32_0 : i32, i32
  }
  func.func @transform_2(%arg0: i32) -> (i32, i32) {
    %c0_i32 = arith.constant 0 : i32
    %c0_i32_0 = arith.constant 0 : i32
    %c0_i32_1 = arith.constant 0 : i32
    return %c0_i32, %c0_i32_0 : i32, i32
  }
  func.func @transform_3(%arg0: i32) -> (i32, i32) {
    %c0_i32 = arith.constant 0 : i32
    %c0_i32_0 = arith.constant 0 : i32
    return %arg0, %c0_i32 : i32, i32
  }
  func.func @transform_4(%arg0: i32) -> (i32, i32, i32) {
    %c0_i32 = arith.constant 0 : i32
    %c0_i32_0 = arith.constant 0 : i32
    %c0_i32_1 = arith.constant 0 : i32
    return %c0_i32, %arg0, %c0_i32_0 : i32, i32, i32
  }
  func.func @transform_5(%arg0: i32) -> (i32, i32) {
    %c0_i32 = arith.constant 0 : i32
    %c0_i32_0 = arith.constant 0 : i32
    return %arg0, %c0_i32 : i32, i32
  }
}

</mosaic_0001>

<bundles_post_ra>
// kernel: gatv2_forward.4
= control target key start
LH: loop header
LB: loop body
LE: loop exit
PB: predicated region body
PF: predicated region fallthrough
CT: control target
= control target key end

     0   :  { %vm14_vm0 = vcmask 64512   ;;  %vm510_vm1 = vcmask 130048   ;;  %s595_s1 = inlined_call_operand.vmem [shape: f32[8,16], index: 1, kind: input, shape index: {}]   ;;  %s596_s0 = inlined_call_operand.vmem [shape: f32[16,8], index: 0, kind: input, shape index: {}]   ;;  %s597_s2 = inlined_call_operand.vmem [shape: f32[16,16], index: 2, kind: output, shape index: {}]  }
   0x1   :  { %v13_v0 = vld [vmem:[%s595_s1] sm:$0xff]  ;;  %v12_v2 = vld [vmem:[%s596_s0 + $0x8] sm:$0xff] }
   0x2   :  { %v11_v1 = vld [vmem:[%s596_s0] sm:$0xff]  ;;  %v52_v3 = vand.u32 4294901760, %v13_v0  ;;  %v19_v5 = vsel %vm14_vm0, %v12_v2, 0 }
   0x3   :  { %v16_v4 = vsel %vm14_vm0, %v11_v1, 0  ;;  %v97_v7 = vand.u32 4294901760, %v19_v5 }
   0x4   :  { %v87_v6 = vand.u32 4294901760, %v16_v4  ;;  %535 = vmatprep.subr.mxu0 %v52_v3  ;;  %v139_v8 = vsub.f32 %v13_v0, %v52_v3 }
   0x5   :  { %536 = vmatpush3.msra.mxu0 %v52_v3  ;;  %v98_v10 = vsub.f32 %v19_v5, %v97_v7 }
   0x6   :  { %v88_v9 = vsub.f32 %v16_v4, %v87_v6  ;;  %542 = vmatprep.mubr.f32.mxu1 %v87_v6  ;;  %v140_v11 = vand.u32 4294901760, %v139_v8  ;;  %545 = vmatprep.subr.mxu0 %v139_v8 }
   0x7   :  { %v99_v13 = vand.u32 4294901760, %v98_v10 }
   0x8   :  { %v89_v12 = vand.u32 4294901760, %v88_v9  ;;  %v141_v14 = vsub.f32 %v139_v8, %v140_v11 }
   0x9   :  { %v100_v16 = vsub.f32 %v98_v10, %v99_v13 }
   0xa   :  { %v90_v15 = vsub.f32 %v88_v9, %v89_v12  ;;  %v142_v17 = vand.u32 4294901760, %v141_v14 }
   0xb   :  { %v101_v19 = vand.u32 4294901760, %v100_v16 }
   0xc   :  { %v91_v18 = vand.u32 4294901760, %v90_v15  ;;  %540 = vmatprep.subr.mxu1 %v142_v17 }
   0xd   :  { %541 = vmatpush3.msra.mxu1 %v142_v17 }
   0xe   :  { %537 = vmatprep.mubr.f32.mxu0 %v91_v18  ;;  %543 = vmatmul.mubr.f32.vlgmr.msra.gmra.mxu1 %v97_v7 }
   0xf   :  { %538 = vmatmul.mubr.f32.vlgmr.msra.gmra.mxu0 %v101_v19  ;;  %550 = vmatprep.subr.mxu1 %v52_v3 }
  0x10   :  { %546 = vmatpush3.msra.mxu0 %v139_v8  ;;  %551 = vmatpush3.msra.mxu1 %v52_v3 }
  0x11   :  { %547 = vmatprep.mubr.f32.mxu0 %v88_v9  ;;  %552 = vmatprep.mubr.f32.mxu1 %v89_v12 }
  0x12   :  { %555 = vmatprep.subr.mxu0 %v140_v11  ;;  %553 = vmatmul.mubr.f32.vlgmr.msra.gmra.mxu1 %v99_v13 }
  0x13   :  { %548 = vmatmul.mubr.f32.vlgmr.msra.gmra.mxu0 %v98_v10  ;;  %560 = vmatprep.subr.mxu1 %v52_v3 }
  0x14   :  { %556 = vmatpush3.msra.mxu0 %v140_v11  ;;  %561 = vmatpush3.msra.mxu1 %v52_v3 }
  0x15   :  { %557 = vmatprep.mubr.f32.mxu0 %v87_v6  ;;  %562 = vmatprep.mubr.f32.mxu1 %v87_v6 }
  0x16   :  { %563 = vmatmul.mubr.f32.vlgmr.msra.gmra.mxu1 %v97_v7 }
  0x17   :  { %558 = vmatmul.mubr.f32.vlgmr.msra.gmra.mxu0 %v97_v7 }
  0xce   :  { %v544_v21 = vpop.f32.mrf.mxu1 }
  0xcf   :  { %v539_v20 = vpop.f32.mrf.mxu0 }
  0xd0   :  { %v179_v23 = vpop.f32.mrf.mxu1  ;;  %v186_v24 = vadd.f32 %v544_v21, %v539_v20 }
  0xd1   :  { %v93_v22 = vpop.f32.mrf.mxu0 }
  0xd2   :  { %v554_v26 = vpop.f32.mrf.mxu1  ;;  %v180_v27 = vadd.f32 %v179_v23, %v93_v22 }
  0xd3   :  { %v549_v25 = vpop.f32.mrf.mxu0 }
  0xd4   :  { %v267_v28 = vadd.f32 %v549_v25, %v186_v24  ;;  %v340_v30 = vpop.f32.mrf.mxu1 }
  0xd5   :  { %v259_v29 = vpop.f32.mrf.mxu0 }
  0xd6   :  { %v349_v31 = vadd.f32 %v554_v26, %v267_v28  ;;  %v260_v32 = vadd.f32 %v259_v29, %v180_v27  ;;  %v564_v34 = vpop.f32.mrf.mxu1 }
  0xd7   :  { %v559_v33 = vpop.f32.mrf.mxu0 }
  0xd8   :  { %v341_v35 = vadd.f32 %v340_v30, %v260_v32  ;;  %v429_v36 = vadd.f32 %v559_v33, %v349_v31  ;;  %v500_v40 = vpop.f32.mrf.mxu1 }
  0xd9   :  { %v422_v37 = vpop.f32.mrf.mxu0 }
  0xda   :  { %v507_v38 = vadd.f32 %v564_v34, %v429_v36  ;;  %v423_v39 = vadd.f32 %v422_v37, %v341_v35 }
  0xdc   :  { %512 = vst.msk [vmem:[%s597_s2 + $0x8] sm:$0xff] %vm510_vm1, %v507_v38  ;;  %v501_v41 = vadd.f32 %v500_v40, %v423_v39 }
  0xde   :  { %511 = vst.msk [vmem:[%s597_s2] sm:$0xff] %vm510_vm1, %v501_v41 }

// kernel: gatv2_forward.6
= control target key start
LH: loop header
LB: loop body
LE: loop exit
PB: predicated region body
PF: predicated region fallthrough
CT: control target
= control target key end

     0   :  { %vm25_vm2 = vcmask 130048   ;;  %vm534_vm3 = vcmask 64512   ;;  %s646_s1 = inlined_call_operand.vmem [shape: f32[16,8], index: 1, kind: input, shape index: {}]   ;;  %s647_s0 = inlined_call_operand.vmem [shape: f32[16,16], index: 0, kind: input, shape index: {}]   ;;  %s648_s2 = inlined_call_operand.vmem [shape: f32[16,8], index: 2, kind: output, shape index: {}]  }
   0x1   :  { %v24_v0 = vld [vmem:[%s646_s1 + $0x8] sm:$0xff]  ;;  %v23_v1 = vld [vmem:[%s646_s1] sm:$0xff] }
   0x2   :  { %v11_v2 = vld [vmem:[%s647_s0] sm:$0xff]  ;;  %v61_v3 = vand.u32 4294901760, %v24_v0  ;;  %v64_v4 = vand.u32 4294901760, %v23_v1  ;;  %v12_v5 = vld [vmem:[%s647_s0 + $0x8] sm:$0xff] }
   0x3   :  { %v15_v6 = vmul.f32 1.442695, %v11_v2  ;;  %v17_v7 = vmul.f32 1.442695, %v12_v5  ;;  %vm13_vm0 = vcmp.gt.f32.partialorder %v11_v2, 0.0  ;;  %vm14_vm1 = vcmp.gt.f32.partialorder %v12_v5, 0.0 }
   0x4   :  { %567 = vmatprep.subr.mxu0 %v61_v3  ;;  %v149_v8 = vsub.f32 %v24_v0, %v61_v3  ;;  %v156_v9 = vsub.f32 %v23_v1, %v64_v4 }
   0x5   :  { %609 = vpow2.f32 %v15_v6  ;;  %568 = vmatpush3.msra.mxu0 %v61_v3 }
   0x6   :  { %611 = vpow2.f32 %v17_v7  ;;  %v150_v10 = vand.u32 4294901760, %v149_v8  ;;  %569 = vmatprep.subr.mxu0 %v64_v4  ;;  %v157_v11 = vand.u32 4294901760, %v156_v9 }
   0x7   :  { %570 = vmatpush3.msra.mxu0 %v64_v4 }
   0x8   :  { %v151_v12 = vsub.f32 %v149_v8, %v150_v10  ;;  %v158_v13 = vsub.f32 %v156_v9, %v157_v11  ;;  %581 = vmatprep.subr.mxu0 %v149_v8 }
   0xa   :  { %v152_v14 = vand.u32 4294901760, %v151_v12  ;;  %v159_v15 = vand.u32 4294901760, %v158_v13 }
   0xc   :  { %574 = vmatprep.subr.mxu1 %v152_v14 }
   0xd   :  { %575 = vmatpush3.msra.mxu1 %v152_v14 }
   0xe   :  { %576 = vmatprep.subr.mxu1 %v159_v15 }
   0xf   :  { %577 = vmatpush3.msra.mxu1 %v159_v15 }
  0x10   :  { %588 = vmatprep.subr.mxu1 %v61_v3 }
  0x12   :  { %v610_v16 = vpop.eup %609 }
  0x13   :  { %v612_v17 = vpop.eup %611  ;;  %v541_v18 = vadd.f32 -1.0, %v610_v16 }
  0x14   :  { %v542_v19 = vadd.f32 -1.0, %v612_v17 }
  0x15   :  { %v21_v20 = vsel %vm13_vm0, %v11_v2, %v541_v18 }
  0x16   :  { %v22_v21 = vsel %vm14_vm1, %v12_v5, %v542_v19  ;;  %v27_v22 = vsel %vm25_vm2, %v21_v20, 0 }
  0x17   :  { %v30_v23 = vsel %vm25_vm2, %v22_v21, 0  ;;  %v99_v24 = vand.u32 4294901760, %v27_v22 }
  0x18   :  { %v109_v25 = vand.u32 4294901760, %v30_v23 }
  0x19   :  { %v100_v26 = vsub.f32 %v27_v22, %v99_v24  ;;  %578 = vmatprep.mubr.f32.mxu1 %v99_v24 }
  0x1a   :  { %v110_v27 = vsub.f32 %v30_v23, %v109_v25  ;;  %579 = vmatmul.mubr.f32.vlgmr.msra.gmra.mxu1 %v109_v25 }
  0x1b   :  { %v101_v28 = vand.u32 4294901760, %v100_v26  ;;  %589 = vmatpush3.msra.mxu1 %v61_v3 }
  0x1c   :  { %v111_v29 = vand.u32 4294901760, %v110_v27  ;;  %590 = vmatprep.subr.mxu1 %v64_v4 }
  0x1d   :  { %v102_v30 = vsub.f32 %v100_v26, %v101_v28  ;;  %591 = vmatpush3.msra.mxu1 %v64_v4  ;;  %592 = vmatprep.mubr.f32.mxu1 %v101_v28 }
  0x1e   :  { %v112_v31 = vsub.f32 %v110_v27, %v111_v29  ;;  %593 = vmatmul.mubr.f32.vlgmr.msra.gmra.mxu1 %v111_v29  ;;  %602 = vmatprep.subr.mxu1 %v61_v3 }
  0x1f   :  { %v103_v32 = vand.u32 4294901760, %v102_v30  ;;  %603 = vmatpush3.msra.mxu1 %v61_v3  ;;  %606 = vmatprep.mubr.f32.mxu1 %v99_v24 }
  0x20   :  { %v113_v33 = vand.u32 4294901760, %v112_v31  ;;  %604 = vmatprep.subr.mxu1 %v64_v4 }
  0x21   :  { %571 = vmatprep.mubr.f32.mxu0 %v103_v32  ;;  %605 = vmatpush3.msra.mxu1 %v64_v4 }
  0x22   :  { %572 = vmatmul.mubr.f32.vlgmr.msra.gmra.mxu0 %v113_v33  ;;  %607 = vmatmul.mubr.f32.vlgmr.msra.gmra.mxu1 %v109_v25 }
  0x23   :  { %582 = vmatpush3.msra.mxu0 %v149_v8  ;;  %585 = vmatprep.mubr.f32.mxu0 %v100_v26 }
  0x24   :  { %583 = vmatprep.subr.mxu0 %v156_v9 }
  0x25   :  { %584 = vmatpush3.msra.mxu0 %v156_v9 }
  0x26   :  { %595 = vmatprep.subr.mxu0 %v150_v10  ;;  %586 = vmatmul.mubr.f32.vlgmr.msra.gmra.mxu0 %v110_v27 }
  0x27   :  { %596 = vmatpush3.msra.mxu0 %v150_v10  ;;  %599 = vmatprep.mubr.f32.mxu0 %v99_v24 }
  0x28   :  { %597 = vmatprep.subr.mxu0 %v157_v11 }
  0x29   :  { %598 = vmatpush3.msra.mxu0 %v157_v11 }
  0x2a   :  { %600 = vmatmul.mubr.f32.vlgmr.msra.gmra.mxu0 %v109_v25 }
  0xda   :  { %v580_v34 = vpop.f32.mrf.mxu1 }
  0xdc   :  { %v196_v35 = vpop.f32.mrf.mxu1 }
  0xde   :  { %v594_v37 = vpop.f32.mrf.mxu1 }
  0xe0   :  { %v360_v41 = vpop.f32.mrf.mxu1 }
  0xe2   :  { %v573_v36 = vpop.f32.mrf.mxu0  ;;  %v608_v48 = vpop.f32.mrf.mxu1 }
  0xe3   :  { %v203_v39 = vadd.f32 %v580_v34, %v573_v36 }
  0xe4   :  { %v105_v38 = vpop.f32.mrf.mxu0  ;;  %v524_v54 = vpop.f32.mrf.mxu1 }
  0xe5   :  { %v197_v42 = vadd.f32 %v196_v35, %v105_v38 }
  0xe6   :  { %v587_v40 = vpop.f32.mrf.mxu0 }
  0xe7   :  { %v286_v43 = vadd.f32 %v587_v40, %v203_v39 }
  0xe8   :  { %v278_v44 = vpop.f32.mrf.mxu0 }
  0xe9   :  { %v369_v45 = vadd.f32 %v594_v37, %v286_v43  ;;  %v279_v46 = vadd.f32 %v278_v44, %v197_v42 }
  0xea   :  { %v601_v47 = vpop.f32.mrf.mxu0 }
  0xeb   :  { %v361_v49 = vadd.f32 %v360_v41, %v279_v46  ;;  %v452_v50 = vadd.f32 %v601_v47, %v369_v45 }
  0xec   :  { %v445_v51 = vpop.f32.mrf.mxu0 }
  0xed   :  { %v531_v52 = vadd.f32 %v608_v48, %v452_v50  ;;  %v446_v53 = vadd.f32 %v445_v51, %v361_v49 }
  0xef   :  { %536 = vst.msk [vmem:[%s648_s2 + $0x8] sm:$0xff] %vm534_vm3, %v531_v52  ;;  %v525_v55 = vadd.f32 %v524_v54, %v446_v53 }
  0xf1   :  { %535 = vst.msk [vmem:[%s648_s2] sm:$0xff] %vm534_vm3, %v525_v55 }

// kernel: gatv2_forward.7
= control target key start
LH: loop header
LB: loop body
LE: loop exit
PB: predicated region body
PF: predicated region fallthrough
CT: control target
= control target key end

     0   :  { %11 = vsyncpa [#allocation4], 0  ;;  %s1466_s0 = inlined_call_operand.vmem [shape: f32[8], index: 0, kind: input, shape index: {}]   ;;  %s1467_s1 = inlined_call_operand.vmem [shape: f32[16,8], index: 1, kind: input, shape index: {}]   ;;  %s1468_s2 = inlined_call_operand.vmem [shape: f32[8,16], index: 2, kind: input, shape index: {}]   ;;  %s1469_s3 = inlined_call_operand.vmem [shape: f32[16,16], index: 3, kind: input, shape index: {}]   ;;  %s1470_s4 = inlined_call_operand.vmem [shape: f32[1,16,8], index: 4, kind: output, shape index: {0}]   ;;  %s1471_s5 = inlined_call_operand.hbm [shape: f32[16,16], index: 5, kind: output, shape index: {1}]  }
   0x1   :  { %12 = vsyncpa [#allocation3], 0 }
   0x2   :  { %14 = vsyncpa [#allocation3 + $0x1], 0  ;;  %s1265_s18 = smov 0   ;;  %s1267_s19 = smov 0  }
   0x3   :  { %s1269_s20 = smov 0   ;;  %s1271_s21 = smov 0  }
   0x4 LB: > { %s1286_s22 = sadd.s32 4294967295, %s1221_s21   ;;  %s988_s23 = sadd.s32 4294967294, %s1221_s21   ;;  %s1221_s21 = sphi %s1271_s21, %s1478_s21   ;;  %s1217_s20 = sphi %s1269_s20, %s1477_s20   ;;  %s1213_s19 = sphi %s1267_s19, %s1476_s19   ;;  %s1209_s18 = sphi %s1265_s18, %s1475_s18  }
   0x5   : > { %s1290_s24 = sadd.s32 1, %s1221_s21   ;;  %s142_s25 = sadd.s32 1, %s1217_s20 }
   0x6   : > { %s139_s26 = ssub.s32 %s1221_s21, %s1290_s24  ;;  %p152_p0 = scmp.ne.s32.totalorder %s1217_s20, %s1213_s19 }
   0x7   : > { %p140_p1 = scmp.eq.s32.totalorder %s139_s26, 0  ;;  %p153_p2 = scmp.eq.s32.totalorder %s1286_s22, 1 }
   0x8   : > { %p158_p3 = scmp.ne.s32.totalorder %s1213_s19, %s1209_s18  ;;  %p159_p4 = scmp.eq.s32.totalorder %s988_s23, 1 }
   0x9   : > { %s1301_s27 = scalar_select %p140_p1, %s1217_s20, %s142_s25  }
   0xa   : > { %p1303_p5 = por %p153_p2, %p152_p0  ;;  %p1307_p6 = por %p159_p4, %p158_p3 }
   0xb   : > { %p989_p7 = scmp.ge.s32.totalorder %s1221_s21, 1  ;;  %p166_p8 = scmp.lt.s32.totalorder %s1221_s21, 3 }
   0xc   : > { %p1083_p9 = scmp.eq.s32.totalorder %s1286_s22, 0  ;;  %s179_s8 = sshll.u32 %s1466_s0, 4  ;;  %s180_s8 = int_to_ptr.vmem [resolvable:$true] %s179_s8 }
   0xd   : > { %p1314_p10 = pnand %p989_p7, %p166_p8  ;;  %s1142_s9 = scalar_lea.vmem %s180_s8, 16 }
   0xe   : > { %p1143_p13 = scmp.ne.s32.totalorder %s180_s8, %s1142_s9  ;;  %p1150_p3 = scmp.lt.s32.totalorder %s180_s8, %s180_s8 }
   0xf   : > { %p1075_p11 = pneg %p1314_p10  ;;  %p1151_p4 = scmp.lt.s32.totalorder %s1142_s9, %s1142_s9 }
  0x11   : > { %p1076_p12 = pnand %p1083_p9, %p1075_p11  ;;  %p1152_p7 = por %p1151_p4, %p1150_p3 }
  0x13   : > { %p1144_p0 = pneg %p1076_p12 }
  0x15   : > { %p1145_p1 = pnand %p1144_p0, %p1143_p13 }
  0x17   : > { %p1146_p2 = pneg %p1145_p1 }
  0x19   : > { %p1153_p8 = pnand %p1152_p7, %p1146_p2 }
  0x1b   : > { %1156 = shalt.err (!%p1153_p8)
}
  0x1c   : > { %s1223_s10 = smov [#allocation2]   ;;  %205 = sbr.rel (%p1314_p10) target bundleno = 724 (0x2d4), region = 36 }
  0x1d   : > { %1078 = dma.vmem_to_smem (!%p1076_p12), %s180_s8, 16, %s1223_s10, [#allocation4]  }
  0x21   : > { %1200 = dma.done.wait (%p1083_p9), [#allocation4], 16  }
  0x22   : > { %1202 = vsyncadd (%p1083_p9), [#allocation4], 4294967280 }
  0x23   : > { %211 = sfence }
  0x24   : > { %s997_s11 = sshll.u32 %s1286_s22, 3  ;;  %v1224_v0 = vmov 2   ;;  %v1225_v1 = vmov 0   ;;  %v1226_v3 = vmov 3   ;;  %v1227_v4 = vmov 1   ;;  %s1337_s15 = sld [smem:[#allocation2]] }
  0x25   : > { %1131 = vset.pattern.permute.xlu1 %v1224_v0  ;;  %1129 = vset.pattern.permute.xlu0 %v1225_v1  ;;  %s246_s14 = scalar_lea.vmem %s1467_s1, %s997_s11  ;;  %v1228_v5 = vmov 4   ;;  %v1229_v6 = vmov 5   ;;  %v1230_v7 = vmov 6   ;;  %v1231_v8 = vmov 7   ;;  %s1339_s16 = sld [smem:[#allocation2 + $0x2]]  ;;  %v1348_v12 = vld [vmem:[%s1468_s2] sm:$0xff] }
  0x26   : > { %v247_v2 = vld [vmem:[%s246_s14] sm:$0xff]  ;;  %v268_v9 = vlaneseq  ;;  %p237_p9 = scmp.lt.s32.totalorder %s1286_s22, 1  ;;  %s1343_s17 = sld [smem:[#allocation2 + $0x1]]  ;;  %vm389_vm8 = vcmask 130048   ;;  %vm1233_vm10 = vmmov 0  }
  0x27   : > { %304 = vperm.xlu1 %1131, %v247_v2   ;;  %274 = vperm.xlu0 %1129, %v247_v2   ;;  %s1351_s26 = sld [smem:[#allocation2 + $0x3]]  ;;  %s234_s12 = sand.u32 1, %s1213_s19  }
  0x28   : > { %v1335_v10 = vshrl.u32 %v268_v9, 7  ;;  %s1354_s30 = scalar_select %p237_p9, %s1286_s22, 1 }
  0x29   : > { %s1361_s7 = sld [smem:[#allocation2 + $0x4]]  ;;  %s1413_s13 = sshll.u32 %s234_s12, 3 }
  0x2a   : > { %v270_v11 = vsub.s32 0, %v1335_v10  ;;  %v301_v13 = vsub.s32 2, %v1335_v10  ;;  %s260_s6 = smul.f32 0.2, %s1337_s15  ;;  %v316_v16 = vsub.s32 3, %v1335_v10  ;;  %v286_v17 = vsub.s32 1, %v1335_v10 }
  0x2b   : > { %1132 = vset.pattern.permute.xlu1 %v1226_v3  ;;  %1130 = vset.pattern.permute.xlu0 %v1227_v4  ;;  %s1363_s8 = sld [smem:[#allocation2 + $0x5]]  ;;  %s262_s9 = smul.f32 0.2, %s1339_s16  ;;  %v279_v20 = vstv %s1337_s15  ;;  %v331_v26 = vsub.s32 4, %v1335_v10  ;;  %v346_v27 = vsub.s32 5, %v1335_v10  ;;  %v309_v29 = vstv %s1339_s16 }
  0x2c   : > { %319 = vperm.xlu1 %1132, %v247_v2   ;;  %289 = vperm.xlu0 %1130, %v247_v2   ;;  %v271_v14 = vrot.slane %v1348_v12, %v270_v11  ;;  %v302_v15 = vrot.slane %v1348_v12, %v301_v13  ;;  %s995_s10 = sshll.u32 %s1354_s30, 3  ;;  %v280_v21 = vstv %s260_s6  ;;  %s261_s11 = smul.f32 0.2, %s1343_s17  ;;  %v317_v24 = vrot.slane %v1348_v12, %v316_v16 }
  0x2d   : > { %v287_v25 = vrot.slane %v1348_v12, %v286_v17  ;;  %s240_s14 = scalar_lea.vmem %s1469_s3, %s995_s10  ;;  %s263_s15 = smul.f32 0.2, %s1351_s26  ;;  %v310_v30 = vstv %s262_s9  ;;  %v294_v32 = vstv %s1343_s17  ;;  %v324_v39 = vstv %s1351_s26 }
  0x2e   : > { %s1379_s23 = sld [smem:[#allocation2 + $0x6]]  ;;  %v295_v33 = vstv %s261_s11  ;;  %v251_v38 = vld [vmem:[%s240_s14] sm:$0xff]  ;;  %v332_v40 = vrot.slane %v1348_v12, %v331_v26  ;;  %v347_v41 = vrot.slane %v1348_v12, %v346_v27  ;;  %v361_v43 = vsub.s32 6, %v1335_v10  ;;  %s236_s14 = scalar_lea.vmem [#allocation5], %s1413_s13 }
  0x2f   : > { %s264_s25 = smul.f32 0.2, %s1361_s7  ;;  %v325_v42 = vstv %s263_s15  ;;  %v339_v46 = vstv %s1361_s7  ;;  %s1390_s16 = sld [smem:[#allocation2 + $0x7]]  ;;  %v376_v60 = vsub.s32 7, %v1335_v10 }
  0x30   : > { %1133 = vset.pattern.permute.xlu1 %v1228_v5  ;;  %1134 = vset.pattern.permute.xlu0 %v1229_v6  ;;  %v362_v59 = vrot.slane %v1348_v12, %v361_v43  ;;  %s1006_s15 = sshll.u32 %s1286_s22, 7  ;;  %s1234_s7 = smov [#allocation5]  }
  0x31   : > { %334 = vperm.xlu1 %1133, %v247_v2   ;;  %349 = vperm.xlu0 %1134, %v247_v2   ;;  %s265_s6 = smul.f32 0.2, %s1363_s8  ;;  %v340_v49 = vstv %s264_s25  ;;  %v354_v51 = vstv %s1363_s8  ;;  %s1161_s8 = sshll.u32 %s1234_s7, 4  ;;  %s1162_s8 = int_to_ptr.vmem [resolvable:$false] %s1161_s8 }
  0x32   : > { %s1163_s9 = scalar_lea.vmem %s1162_s8, 256 }
  0x33   : > { %v355_v55 = vstv %s265_s6 }
  0x34   : > { %s266_s17 = smul.f32 0.2, %s1379_s23  ;;  %v369_v4 = vstv %s1379_s23  ;;  %s891_s23 = sshll.u32 %s236_s14, 4  ;;  %s892_s23 = int_to_ptr.vmem [resolvable:$true] %s891_s23 }
  0x35   : > { %1135 = vset.pattern.permute.xlu1 %v1230_v7  ;;  %1137 = vset.pattern.permute.xlu0 %v1231_v8  ;;  %s267_s26 = smul.f32 0.2, %s1390_s16  ;;  %v384_v13 = vstv %s1390_s16  ;;  %s889_s16 = scalar_lea.hbm %s1471_s5, %s1006_s15 }
  0x36   : > { %364 = vperm.xlu1 %1135, %v247_v2   ;;  %v370_v5 = vstv %s266_s17  ;;  %s875_s17 = scalar_lea.sflag [#allocation3], %s234_s12  ;;  %p1164_p13 = scmp.lt.s32.totalorder %s892_s23, %s1162_s8 }
  0x37   : > { %v385_v16 = vstv %s267_s26  ;;  %s1157_s26 = scalar_lea.vmem %s892_s23, 128 }
  0x38   : > { %p1158_p10 = scmp.ne.s32.totalorder %s892_s23, %s1157_s26  ;;  %p1165_p0 = scmp.lt.s32.totalorder %s1163_s9, %s1157_s26 }
  0x3a   : > { %1136 = vset.pattern.permute.xlu1 %v1231_v8  ;;  %v377_v8 = vrot.slane %v1348_v12, %v376_v60  ;;  %p1159_p11 = pnand %p1158_p10, %p1303_p5  ;;  %p1166_p1 = por %p1165_p0, %p1164_p13 }
  0x3b   : > { %379 = vperm.xlu1 %1136, %v247_v2  }
  0x3c   : > { %p1160_p12 = pneg %p1159_p11 }
  0x3e   : > { %p1167_p2 = pnand %p1166_p1, %p1160_p12 }
  0xa2   : > { %v305_v18 = vpop.permute.xlu1 %304  ;;  %v275_v19 = vpop.permute.xlu0 %274 }
  0xa3   : > { %v277_v22 = vadd.f32 %v275_v19, %v271_v14  ;;  %v307_v23 = vadd.f32 %v305_v18, %v302_v15 }
  0xa5   : > { %vm278_vm0 = vcmp.ge.f32.partialorder %v277_v22, 0.0  ;;  %vm308_vm1 = vcmp.ge.f32.partialorder %v307_v23, 0.0 }
  0xa6   : > { %v281_v28 = vsel %vm278_vm0, %v279_v20, %v280_v21  ;;  %v311_v44 = vsel %vm308_vm1, %v309_v29, %v310_v30  ;;  %v249_v29 = vld [vmem:[%s1467_s1] sm:$0xff]  ;;  %v1232_v30 = vmov 0.0  }
  0xa7   : > { %v320_v31 = vpop.permute.xlu1 %319  ;;  %v290_v34 = vpop.permute.xlu0 %289  ;;  %v282_v35 = vmul.f32 %v281_v28, %v277_v22  ;;  %v312_v57 = vmul.f32 %v311_v44, %v307_v23  ;;  %v250_v28 = vld [vmem:[%s1467_s1 + $0x8] sm:$0xff]  ;;  %1034 = vmatprep.subr.mxu1 %v1232_v30  ;;  %1038 = vmatprep.mubr.msk.f32.mxu1 %vm1233_vm10, %v1232_v30 }
  0xa8   : > { %v322_v36 = vadd.f32 %v320_v31, %v317_v24  ;;  %v292_v37 = vadd.f32 %v290_v34, %v287_v25  ;;  %v437_v31 = vand.u32 4294901760, %v250_v28  ;;  %1027 = vmatprep.subr.mxu0 %v1232_v30  ;;  %1031 = vmatprep.mubr.msk.f32.mxu0 %vm1233_vm10, %v1232_v30 }
  0xa9   : > { %v283_v47 = vadd.f32 %v282_v35, %v251_v38 }
  0xaa   : > { %vm323_vm2 = vcmp.ge.f32.partialorder %v322_v36, 0.0  ;;  %vm293_vm3 = vcmp.ge.f32.partialorder %v292_v37, 0.0  ;;  %1028 = vmatpush3.msra.mxu0 %v437_v31 }
  0xab   : > { %v296_v45 = vsel %vm293_vm3, %v294_v32, %v295_v33  ;;  %v326_v53 = vsel %vm323_vm2, %v324_v39, %v325_v42  ;;  %v440_v32 = vand.u32 4294901760, %v249_v29  ;;  %v515_v33 = vsub.f32 %v250_v28, %v437_v31  ;;  %1029 = vmatprep.subr.mxu0 %v1232_v30 }
  0xac   : > { %v297_v48 = vmul.f32 %v296_v45, %v292_v37  ;;  %v335_v50 = vpop.permute.xlu1 %334  ;;  %v350_v52 = vpop.permute.xlu0 %349  ;;  %v327_v61 = vmul.f32 %v326_v53, %v322_v36 }
  0xad   : > { %v337_v54 = vadd.f32 %v335_v50, %v332_v40  ;;  %v352_v56 = vadd.f32 %v350_v52, %v347_v41  ;;  %v522_v34 = vsub.f32 %v249_v29, %v440_v32  ;;  %v516_v35 = vand.u32 4294901760, %v515_v33  ;;  %1030 = vmatpush3.msra.mxu0 %v440_v32 }
  0xae   : > { %v298_v58 = vadd.f32 %v297_v48, %v283_v47  ;;  %1041 = vmatprep.subr.mxu0 %v1232_v30 }
  0xaf   : > { %vm338_vm4 = vcmp.ge.f32.partialorder %v337_v54, 0.0  ;;  %vm353_vm5 = vcmp.ge.f32.partialorder %v352_v56, 0.0  ;;  %v523_v36 = vand.u32 4294901760, %v522_v34  ;;  %v517_v37 = vsub.f32 %v515_v33, %v516_v35 }
  0xb0   : > { %v313_v62 = vadd.f32 %v312_v57, %v298_v58  ;;  %v341_v63 = vsel %vm338_vm4, %v339_v46, %v340_v49  ;;  %v356_v0 = vsel %vm353_vm5, %v354_v51, %v355_v55 }
  0xb1   : > { %v342_v1 = vmul.f32 %v341_v63, %v337_v54  ;;  %v365_v2 = vpop.permute.xlu1 %364  ;;  %v357_v7 = vmul.f32 %v356_v0, %v352_v56  ;;  %v524_v38 = vsub.f32 %v522_v34, %v523_v36  ;;  %v518_v39 = vand.u32 4294901760, %v517_v37 }
  0xb2   : > { %v328_v3 = vadd.f32 %v327_v61, %v313_v62  ;;  %v367_v6 = vadd.f32 %v365_v2, %v362_v59 }
  0xb3   : > { %v525_v40 = vand.u32 4294901760, %v524_v38  ;;  %1035 = vmatpush3.msra.mxu1 %v518_v39 }
  0xb4   : > { %v343_v9 = vadd.f32 %v342_v1, %v328_v3  ;;  %vm368_vm6 = vcmp.ge.f32.partialorder %v367_v6, 0.0  ;;  %1036 = vmatprep.subr.mxu1 %v1232_v30 }
  0xb5   : > { %v371_v11 = vsel %vm368_vm6, %v369_v4, %v370_v5  ;;  %1037 = vmatpush3.msra.mxu1 %v525_v40 }
  0xb6   : > { %v380_v10 = vpop.permute.xlu1 %379  ;;  %v358_v14 = vadd.f32 %v357_v7, %v343_v9  ;;  %v372_v15 = vmul.f32 %v371_v11, %v367_v6  ;;  %1048 = vmatprep.subr.mxu1 %v1232_v30 }
  0xb7   : > { %v382_v17 = vadd.f32 %v380_v10, %v377_v8 }
  0xb8   : > { %v373_v20 = vadd.f32 %v372_v15, %v358_v14 }
  0xb9   : > { %vm383_vm7 = vcmp.ge.f32.partialorder %v382_v17, 0.0 }
  0xba   : > { %v386_v18 = vsel %vm383_vm7, %v384_v13, %v385_v16 }
  0xbb   : > { %v387_v19 = vmul.f32 %v386_v18, %v382_v17 }
  0xbd   : > { %v388_v21 = vadd.f32 %v387_v19, %v373_v20 }
  0xbf   : > { %v390_v22 = vsel %vm389_vm8, %v388_v21, -inf }
  0xc0   : > { %391 = vmax.xlane.f32.xlu0 %v390_v22 }
 0x149   : > { %v392_v23 = vpop.xlane.xlu0 %391 }
 0x14a   : > { %vm393_vm9 = vcmp.gt.f32.partialorder %v392_v23, -1e+20 }
 0x14b   : > { %v394_v12 = vsel %vm393_vm9, %v392_v23, 0.0 }
 0x14c   : > { %v395_v24 = vsub.f32 %v388_v21, %v394_v12 }
 0x14e   : > { %v396_v25 = vmul.f32 1.442695, %v395_v24 }
 0x150   : > { %1138 = vpow2.f32 %v396_v25 }
 0x15d   : > { %v1139_v26 = vpop.eup %1138 }
 0x15e   : > { %v398_v27 = vsel %vm389_vm8, %v1139_v26, 0.0 }
 0x15f   : > { %399 = vadd.xlane.f32.xlu1 %v398_v27 }
 0x1e8   : > { %v400_v41 = vpop.xlane.xlu1 %399 }
 0x1e9   : > { %vm401_vm11 = vcmp.gt.f32.partialorder %v400_v41, 0.0 }
 0x1ea   : > { %v402_v42 = vsel %vm401_vm11, %v400_v41, 1.0 }
 0x1eb   : > { %1140 = vrcp.f32 %v402_v42 }
 0x1f8   : > { %v1141_v43 = vpop.eup %1140 }
 0x1f9   : > { %v404_v44 = vmul.f32 %v1141_v43, %v1139_v26 }
 0x1fb   : > { %v406_v45 = vsel %vm389_vm8, %v404_v44, 0  ;;  %869 = vst.msk [vmem:[%s236_s14] sm:$0xff] %vm389_vm8, %v404_v44 }
 0x1fc   : > { %v475_v46 = vand.u32 4294901760, %v406_v45 }
 0x1fe   : > { %v476_v47 = vsub.f32 %v406_v45, %v475_v46  ;;  %1039 = vmatmul.mubr.f32.vlgmr.msra.gmra.mxu1 %v475_v46 }
 0x1ff   : > { %1049 = vmatpush3.msra.mxu1 %v437_v31  ;;  %1052 = vmatprep.mubr.msk.f32.mxu1 %vm1233_vm10, %v1232_v30 }
 0x200   : > { %1050 = vmatprep.subr.mxu1 %v1232_v30  ;;  %v477_v48 = vand.u32 4294901760, %v476_v47 }
 0x201   : > { %1051 = vmatpush3.msra.mxu1 %v440_v32 }
 0x202   : > { %1053 = vmatmul.mubr.f32.vlgmr.msra.gmra.mxu1 %v477_v48  ;;  %1062 = vmatprep.subr.mxu1 %v1232_v30  ;;  %v478_v49 = vsub.f32 %v476_v47, %v477_v48 }
 0x203   : > { %1063 = vmatpush3.msra.mxu1 %v437_v31  ;;  %1066 = vmatprep.mubr.msk.f32.mxu1 %vm1233_vm10, %v1232_v30 }
 0x204   : > { %1064 = vmatprep.subr.mxu1 %v1232_v30  ;;  %v479_v50 = vand.u32 4294901760, %v478_v49 }
 0x205   : > { %1065 = vmatpush3.msra.mxu1 %v440_v32 }
 0x206   : > { %1032 = vmatmul.mubr.f32.vlgmr.msra.gmra.mxu0 %v479_v50  ;;  %1067 = vmatmul.mubr.f32.vlgmr.msra.gmra.mxu1 %v475_v46 }
 0x207   : > { %1042 = vmatpush3.msra.mxu0 %v515_v33  ;;  %1045 = vmatprep.mubr.msk.f32.mxu0 %vm1233_vm10, %v1232_v30 }
 0x208   : > { %1043 = vmatprep.subr.mxu0 %v1232_v30 }
 0x209   : > { %1044 = vmatpush3.msra.mxu0 %v522_v34 }
 0x20a   : > { %1055 = vmatprep.subr.mxu0 %v1232_v30  ;;  %1046 = vmatmul.mubr.f32.vlgmr.msra.gmra.mxu0 %v476_v47 }
 0x20b   : > { %1056 = vmatpush3.msra.mxu0 %v516_v35  ;;  %1059 = vmatprep.mubr.msk.f32.mxu0 %vm1233_vm10, %v1232_v30 }
 0x20c   : > { %1057 = vmatprep.subr.mxu0 %v1232_v30 }
 0x20d   : > { %1058 = vmatpush3.msra.mxu0 %v523_v36 }
 0x20e   : > { %1060 = vmatmul.mubr.f32.vlgmr.msra.gmra.mxu0 %v475_v46 }
 0x20f   : > { %1170 = shalt.err (!%p1167_p2)
}
 0x210   : > { %s1171_s22 = scalar_lea.hbm %s889_s16, 128  ;;  %s1175_s13 = scalar_lea.hbm %s1471_s5, 256 }
 0x211   : > { %p1172_p3 = scmp.ne.s32.totalorder %s889_s16, %s1171_s22  ;;  %p1176_p8 = scmp.lt.s32.totalorder %s889_s16, %s1471_s5 }
 0x212   : > { %p1177_p9 = scmp.lt.s32.totalorder %s1175_s13, %s1171_s22 }
 0x213   : > { %p1173_p4 = pnand %p1172_p3, %p1303_p5 }
 0x214   : > { %p1178_p10 = por %p1177_p9, %p1176_p8 }
 0x215   : > { %p1174_p7 = pneg %p1173_p4 }
 0x217   : > { %p1179_p11 = pnand %p1178_p10, %p1174_p7 }
 0x219   : > { %1182 = shalt.err (!%p1179_p11)
}
 0x21a   : > { %1073 = dma.vmem_to_hbm [thread:$0]  (%p1303_p5), %s892_s23, 128, %s889_s16, %s875_s17   ;;  %vm867_vm12 = vcmask 64512  }
 0x21b   : > { %s244_s23 = scalar_lea.vmem %s1470_s4, %s995_s10 }
 0x2be   : > { %v562_v51 = vpop.f32.mrf.mxu1 }
 0x2c0   : > { %v1040_v52 = vpop.f32.mrf.mxu1 }
 0x2c2   : > { %v713_v53 = vpop.f32.mrf.mxu1 }
 0x2c4   : > { %v1054_v54 = vpop.f32.mrf.mxu1 }
 0x2c6   : > { %v481_v55 = vpop.f32.mrf.mxu0  ;;  %v863_v56 = vpop.f32.mrf.mxu1 }
 0x2c7   : > { %v563_v59 = vadd.f32 %v562_v51, %v481_v55 }
 0x2c8   : > { %v1033_v57 = vpop.f32.mrf.mxu0  ;;  %v1068_v58 = vpop.f32.mrf.mxu1 }
 0x2ca   : > { %v638_v60 = vpop.f32.mrf.mxu0 }
 0x2cb   : > { %v639_v61 = vadd.f32 %v638_v60, %v563_v59 }
 0x2cc   : > { %v1047_v62 = vpop.f32.mrf.mxu0 }
 0x2cd   : > { %v714_v63 = vadd.f32 %v713_v53, %v639_v61 }
 0x2ce   : > { %v790_v0 = vpop.f32.mrf.mxu0 }
 0x2cf   : > { %v791_v1 = vadd.f32 %v790_v0, %v714_v63 }
 0x2d0   : > { %v1061_v2 = vpop.f32.mrf.mxu0 }
 0x2d1   : > { %v864_v3 = vadd.f32 %v863_v56, %v791_v1 }
 0x2d3   : > { %868 = vst.msk [vmem:[%s244_s23] sm:$0xff] %vm867_vm12, %v864_v3 }
 0x2d4 PF: > { %p1085_p5 = scmp.ge.s32.totalorder %s1221_s21, 2  ;;  %s910_s6 = sand.u32 1, %s1209_s18  }
 0x2d5   : > { %s911_s16 = scalar_lea.sflag [#allocation3], %s910_s6 }
 0x2d6   : > { %p1080_p12 = pnand %p1085_p5, %p1307_p6 }
 0x2d8   : > { %p1081_p13 = pneg %p1080_p12 }
 0x2da   : > { %1204 = dma.done.wait (%p1081_p13), %s911_s16, 128  }
 0x2db   : > { %1206 = vsyncadd (%p1081_p13), %s911_s16, 4294967168  ;;  %p17_p0 = scmp.ge.s32.totalorder %s1290_s24, 4   ;;  %s1475_s18 = smov %s1213_s19 }
 0x2dc   : > { %s1476_s19 = smov %s1217_s20  ;;  %s1477_s20 = smov %s1301_s27 }
 0x2dd   : > { %s1478_s21 = smov %s1290_s24  ;;  %19 = sbr.rel (!%p17_p0) target bundleno = 4 (0x4), region = 89 }
 0x2e2   :  { %916 = vsyncpa [#allocation3], 1 }
 0x2e3   :  { %918 = vsyncpa [#allocation3 + $0x1], 1 }
 0x2e4   :  { %919 = vsyncpa [#allocation4], 1 }
 0x2e5   :  { %921 = vsyncpa [#allocation4 + $0x1], 1 }

// kernel: gatv2_forward.5
= control target key start
LH: loop header
LB: loop body
LE: loop exit
PB: predicated region body
PF: predicated region fallthrough
CT: control target
= control target key end

     0   :  { %9 = vsyncpa [#allocation3], 0  ;;  %s2930_s15 = smov 0   ;;  %s2932_s16 = smov 0   ;;  %s3382_s0 = inlined_call_operand.vmem [shape: f32[4], index: 0, kind: input, shape index: {}]   ;;  %s3383_s1 = inlined_call_operand.vmem [shape: f32[16,16], index: 1, kind: input, shape index: {}]   ;;  %s3384_s2 = inlined_call_operand.vmem [shape: f32[16,16], index: 2, kind: input, shape index: {}]   ;;  %s3385_s3 = inlined_call_operand.vmem [shape: f32[16,16], index: 3, kind: input, shape index: {}]   ;;  %s3386_s4 = inlined_call_operand.vmem [shape: f32[4,16,4], index: 4, kind: output, shape index: {}]  }
   0x1   :  { %s2934_s17 = smov 0  }
   0x2 LB: > { %s2943_s18 = sadd.s32 4294967295, %s2881_s17   ;;  %s2945_s19 = sadd.s32 1, %s2881_s17   ;;  %s2881_s17 = sphi %s2934_s17, %s3391_s17   ;;  %s2877_s16 = sphi %s2932_s16, %s3390_s16   ;;  %s2873_s15 = sphi %s2930_s15, %s3389_s15  }
   0x3   : > { %s108_s20 = ssub.s32 %s2881_s17, %s2945_s19  ;;  %s111_s21 = sadd.s32 1, %s2877_s16 }
   0x4   : > { %p109_p0 = scmp.eq.s32.totalorder %s108_s20, 0  ;;  %p121_p1 = scmp.ne.s32.totalorder %s2877_s16, %s2873_s15 }
   0x5   : > { %p122_p2 = scmp.eq.s32.totalorder %s2943_s18, 1  ;;  %p2493_p3 = scmp.ge.s32.totalorder %s2881_s17, 1 }
   0x6   : > { %s2953_s22 = scalar_select %p109_p0, %s2877_s16, %s111_s21  }
   0x7   : > { %p2955_p4 = por %p122_p2, %p121_p1  ;;  %p135_p5 = scmp.lt.s32.totalorder %s2881_s17, 3 }
   0x8   : > { %p2759_p6 = scmp.eq.s32.totalorder %s2943_s18, 0  ;;  %s148_s27 = sshll.u32 %s3382_s0, 4  ;;  %s149_s27 = int_to_ptr.vmem [resolvable:$true] %s148_s27 }
   0x9   : > { %p2960_p7 = pnand %p2493_p3, %p135_p5  ;;  %s2840_s28 = scalar_lea.vmem %s149_s27, 16 }
   0xa   : > { %p2841_p10 = scmp.ne.s32.totalorder %s149_s27, %s2840_s28  ;;  %p2848_p0 = scmp.lt.s32.totalorder %s149_s27, %s149_s27 }
   0xb   : > { %p2755_p8 = pneg %p2960_p7  ;;  %p2849_p1 = scmp.lt.s32.totalorder %s2840_s28, %s2840_s28 }
   0xd   : > { %p2756_p9 = pnand %p2759_p6, %p2755_p8  ;;  %p2850_p2 = por %p2849_p1, %p2848_p0 }
   0xf   : > { %p2842_p11 = pneg %p2756_p9 }
  0x11   : > { %p2843_p12 = pnand %p2842_p11, %p2841_p10 }
  0x13   : > { %p2844_p13 = pneg %p2843_p12 }
  0x15   : > { %p2851_p3 = pnand %p2850_p2, %p2844_p13 }
  0x17   : > { %2854 = shalt.err (!%p2851_p3)
}
  0x18   : > { %s2883_s29 = smov [#allocation2]   ;;  %174 = sbr.rel (%p2960_p7) target bundleno = 785 (0x311), region = 36 }
  0x19   : > { %2758 = dma.vmem_to_smem (!%p2756_p9), %s149_s27, 16, %s2883_s29, [#allocation3]  }
  0x1d   : > { %2868 = dma.done.wait (%p2759_p6), [#allocation3], 16  }
  0x1e   : > { %2870 = vsyncadd (%p2759_p6), [#allocation3], 4294967280 }
  0x1f   : > { %180 = sfence }
  0x20   : > { %s2500_s30 = sshll.u32 %s2943_s18, 3  ;;  %v2884_v0 = vmov 2   ;;  %v2885_v1 = vmov 0   ;;  %v2886_v3 = vmov 3   ;;  %v2887_v4 = vmov 1   ;;  %s211_s8 = sld [smem:[#allocation2]] }
  0x21   : > { %2809 = vset.pattern.permute.xlu1 %v2884_v0  ;;  %2807 = vset.pattern.permute.xlu0 %v2885_v1  ;;  %s204_s7 = scalar_lea.vmem %s3383_s1, %s2500_s30  ;;  %v2888_v5 = vmov 4   ;;  %v2889_v6 = vmov 5   ;;  %v2890_v7 = vmov 6   ;;  %v2891_v8 = vmov 8   ;;  %p199_p5 = scmp.lt.s32.totalorder %s2943_s18, 1  ;;  %v2995_v21 = vld [vmem:[%s3384_s2] sm:$0xff] }
  0x22   : > { %v205_v2 = vld [vmem:[%s204_s7] sm:$0xff]  ;;  %v2892_v9 = vmov 7   ;;  %v2893_v10 = vmov 11   ;;  %v2894_v11 = vmov 9   ;;  %v2895_v12 = vmov 14   ;;  %s2986_s9 = sld [smem:[#allocation2 + $0x2]] }
  0x23   : > { %255 = vperm.xlu1 %2809, %v205_v2   ;;  %225 = vperm.xlu0 %2807, %v205_v2   ;;  %v2896_v13 = vmov 10   ;;  %v2897_v14 = vmov 15   ;;  %v2898_v15 = vmov 12   ;;  %v2899_v16 = vmov 13   ;;  %s2990_s10 = sld [smem:[#allocation2 + $0x1]]  ;;  %v3058_v55 = vld [vmem:[%s3384_s2 + $0x8] sm:$0xff] }
  0x24   : > { %v219_v17 = vlaneseq  ;;  %s200_s13 = scalar_select %p199_p5, %s2943_s18, 1  ;;  %vm280_vm6 = vcmask 130048  }
  0x25   : > { %s2998_s14 = sld [smem:[#allocation2 + $0x3]]  ;;  %s2903_s11 = smov 120  }
  0x26   : > { %v2983_v18 = vshrl.u32 %v219_v17, 7  ;;  %s215_s17 = smul.f32 0.2, %s211_s8  ;;  %s2499_s20 = sshll.u32 %s200_s13, 3  ;;  %v3007_v28 = vstv %s211_s8 }
  0x27   : > { %2810 = vset.pattern.permute.xlu1 %v2886_v3  ;;  %2808 = vset.pattern.permute.xlu0 %v2887_v4  ;;  %s202_s26 = scalar_lea.vmem %s3385_s3, %s2499_s20  ;;  %s2904_s12 = smov 116  }
  0x28   : > { %270 = vperm.xlu1 %2810, %v205_v2   ;;  %240 = vperm.xlu0 %2808, %v205_v2   ;;  %v221_v19 = vsub.s32 0, %v2983_v18  ;;  %v252_v20 = vsub.s32 2, %v2983_v18  ;;  %v267_v24 = vsub.s32 3, %v2983_v18  ;;  %v237_v25 = vsub.s32 1, %v2983_v18  ;;  %s217_s21 = smul.f32 0.2, %s2986_s9 }
  0x29   : > { %v3009_v29 = vstv %s215_s17  ;;  %s216_s27 = smul.f32 0.2, %s2990_s10  ;;  %v762_v34 = vsub.s32 4, %v2983_v18  ;;  %v775_v35 = vsub.s32 5, %v2983_v18  ;;  %v3027_v37 = vstv %s2986_s9  ;;  %v3031_v39 = vld [vmem:[%s202_s26] sm:$0xff]  ;;  %s196_s13 = sand.u32 1, %s2873_s15  }
  0x2a   : > { %v222_v22 = vrot.slane %v2995_v21, %v221_v19  ;;  %v253_v23 = vrot.slane %v2995_v21, %v252_v20  ;;  %v268_v32 = vrot.slane %v2995_v21, %v267_v24  ;;  %v238_v33 = vrot.slane %v2995_v21, %v237_v25 }
  0x2b   : > { %s218_s28 = smul.f32 0.2, %s2998_s14  ;;  %v3029_v38 = vstv %s217_s21  ;;  %v3034_v42 = vstv %s2990_s10  ;;  %v3036_v45 = vstv %s216_s27  ;;  %v3039_v47 = vstv %s2998_s14  ;;  %s2901_s10 = smov 124  }
  0x2c   : > { %2811 = vset.pattern.permute.xlu1 %v2888_v5  ;;  %2812 = vset.pattern.permute.xlu0 %v2889_v6  ;;  %v763_v48 = vrot.slane %v2995_v21, %v762_v34  ;;  %v776_v49 = vrot.slane %v2995_v21, %v775_v35  ;;  %v788_v50 = vsub.s32 6, %v2983_v18  ;;  %v1302_v1 = vrot.slane %v3058_v55, %v221_v19  ;;  %s2498_s14 = sshll.u32 %s196_s13, 5  ;;  %s2381_s21 = scalar_lea.vmem (%p2955_p4), %s3386_s4, %s2500_s30 }
  0x2d   : > { %765 = vperm.xlu1 %2811, %v205_v2   ;;  %778 = vperm.xlu0 %2812, %v205_v2   ;;  %v3049_v52 = vstv %s218_s28  ;;  %s3351_s17 = scalar_lea.vmem [#allocation4], %s2498_s14 }
  0x2e   : > { %v789_v0 = vrot.slane %v2995_v21, %v788_v50 }
  0x31   : > { %2813 = vset.pattern.permute.xlu1 %v2890_v7  ;;  %2815 = vset.pattern.permute.xlu0 %v2891_v8 }
  0x32   : > { %791 = vperm.xlu1 %2813, %v205_v2   ;;  %1304 = vperm.xlu0 %2815, %v205_v2  }
  0x36   : > { %2814 = vset.pattern.permute.xlu1 %v2892_v9  ;;  %2818 = vset.pattern.permute.xlu0 %v2893_v10 }
  0x37   : > { %804 = vperm.xlu1 %2814, %v205_v2   ;;  %1343 = vperm.xlu0 %2818, %v205_v2  }
  0x3b   : > { %2816 = vset.pattern.permute.xlu1 %v2894_v11  ;;  %2821 = vset.pattern.permute.xlu0 %v2895_v12 }
  0x3c   : > { %1317 = vperm.xlu1 %2816, %v205_v2   ;;  %1867 = vperm.xlu0 %2821, %v205_v2  }
  0x40   : > { %2817 = vset.pattern.permute.xlu1 %v2896_v13  ;;  %2823 = vset.pattern.permute.xlu0 %v2897_v14 }
  0x41   : > { %1330 = vperm.xlu1 %2817, %v205_v2  }
  0x45   : > { %2819 = vset.pattern.permute.xlu1 %v2898_v15 }
  0x46   : > { %1841 = vperm.xlu1 %2819, %v205_v2  }
  0x4a   : > { %2820 = vset.pattern.permute.xlu1 %v2899_v16 }
  0x4b   : > { %1854 = vperm.xlu1 %2820, %v205_v2  }
  0x4f   : > { %2822 = vset.pattern.permute.xlu1 %v2897_v14 }
  0x50   : > { %1880 = vperm.xlu1 %2822, %v205_v2   ;;  %v801_v2 = vsub.s32 7, %v2983_v18 }
  0x52   : > { %v802_v15 = vrot.slane %v2995_v21, %v801_v2  ;;  %v1315_v21 = vrot.slane %v3058_v55, %v237_v25 }
  0x9e   : > { %v256_v26 = vpop.permute.xlu1 %255  ;;  %v226_v27 = vpop.permute.xlu0 %225 }
  0x9f   : > { %v228_v30 = vadd.f32 %v226_v27, %v222_v22  ;;  %v258_v31 = vadd.f32 %v256_v26, %v253_v23  ;;  %v1341_v27 = vrot.slane %v3058_v55, %v267_v24  ;;  %v1328_v24 = vrot.slane %v3058_v55, %v252_v20 }
  0xa1   : > { %vm229_vm0 = vcmp.ge.f32.partialorder %v228_v30, 0.0  ;;  %vm259_vm1 = vcmp.ge.f32.partialorder %v258_v31, 0.0 }
  0xa2   : > { %v232_v36 = vsel %vm229_vm0, %v3007_v28, %v3009_v29  ;;  %v262_v53 = vsel %vm259_vm1, %v3027_v37, %v3029_v38 }
  0xa3   : > { %v233_v40 = vmul.f32 %v232_v36, %v228_v30  ;;  %v271_v41 = vpop.permute.xlu1 %270  ;;  %v241_v43 = vpop.permute.xlu0 %240  ;;  %v263_v62 = vmul.f32 %v262_v53, %v258_v31 }
  0xa4   : > { %v273_v44 = vadd.f32 %v271_v41, %v268_v32  ;;  %v243_v46 = vadd.f32 %v241_v43, %v238_v33 }
  0xa5   : > { %v234_v51 = vadd.f32 %v233_v40, %v3031_v39 }
  0xa6   : > { %vm274_vm2 = vcmp.ge.f32.partialorder %v273_v44, 0.0  ;;  %vm244_vm3 = vcmp.ge.f32.partialorder %v243_v46, 0.0 }
  0xa7   : > { %v247_v54 = vsel %vm244_vm3, %v3034_v42, %v3036_v45  ;;  %v277_v59 = vsel %vm274_vm2, %v3039_v47, %v3049_v52 }
  0xa8   : > { %v248_v56 = vmul.f32 %v247_v54, %v243_v46  ;;  %v766_v57 = vpop.permute.xlu1 %765  ;;  %v779_v58 = vpop.permute.xlu0 %778  ;;  %v278_v3 = vmul.f32 %v277_v59, %v273_v44 }
  0xa9   : > { %v768_v60 = vadd.f32 %v766_v57, %v763_v48  ;;  %v781_v61 = vadd.f32 %v779_v58, %v776_v49  ;;  %v1839_v57 = vrot.slane %v3058_v55, %v762_v34 }
  0xaa   : > { %v249_v63 = vadd.f32 %v248_v56, %v234_v51  ;;  %v1865_v56 = vrot.slane %v3058_v55, %v788_v50  ;;  %v1852_v50 = vrot.slane %v3058_v55, %v775_v35  ;;  %v1878_v35 = vrot.slane %v3058_v55, %v801_v2 }
  0xab   : > { %vm769_vm4 = vcmp.ge.f32.partialorder %v768_v60, 0.0  ;;  %vm782_vm5 = vcmp.ge.f32.partialorder %v781_v61, 0.0 }
  0xac   : > { %v770_v4 = vsel %vm769_vm4, %v3007_v28, %v3009_v29  ;;  %v783_v5 = vsel %vm782_vm5, %v3034_v42, %v3036_v45  ;;  %v264_v6 = vadd.f32 %v263_v62, %v249_v63  ;;  %vm2902_vm4 = vmmov 0  }
  0xad   : > { %v771_v7 = vmul.f32 %v770_v4, %v768_v60  ;;  %v792_v8 = vpop.permute.xlu1 %791  ;;  %v1305_v9 = vpop.permute.xlu0 %1304  ;;  %v784_v14 = vmul.f32 %v783_v5, %v781_v61 }
  0xae   : > { %v794_v10 = vadd.f32 %v792_v8, %v789_v0  ;;  %v3071_v11 = vadd.f32 %v278_v3, %v264_v6  ;;  %v1307_v12 = vadd.f32 %v1305_v9, %v1302_v1 }
  0xaf   : > { %v772_v13 = vadd.f32 %v771_v7, %v3031_v39 }
  0xb0   : > { %vm795_vm7 = vcmp.ge.f32.partialorder %v794_v10, 0.0  ;;  %v281_v16 = vsel %vm280_vm6, %v3071_v11, -inf  ;;  %vm1308_vm8 = vcmp.ge.f32.partialorder %v1307_v12, 0.0 }
  0xb1   : > { %v796_v17 = vsel %vm795_vm7, %v3027_v37, %v3029_v38  ;;  %282 = vmax.xlane.f32.xlu1 %v281_v16  ;;  %v785_v22 = vadd.f32 %v784_v14, %v772_v13  ;;  %v1309_v30 = vsel %vm1308_vm8, %v3007_v28, %v3009_v29 }
  0xb2   : > { %v805_v19 = vpop.permute.xlu1 %804  ;;  %v797_v23 = vmul.f32 %v796_v17, %v794_v10  ;;  %v1344_v31 = vpop.permute.xlu0 %1343  ;;  %v1310_v40 = vmul.f32 %v1309_v30, %v1307_v12 }
  0xb3   : > { %v807_v26 = vadd.f32 %v805_v19, %v802_v15  ;;  %v1346_v43 = vadd.f32 %v1344_v31, %v1341_v27 }
  0xb4   : > { %v798_v41 = vadd.f32 %v797_v23, %v785_v22  ;;  %v1311_v48 = vadd.f32 %v1310_v40, %v3031_v39 }
  0xb5   : > { %vm808_vm9 = vcmp.ge.f32.partialorder %v807_v26, 0.0  ;;  %vm1347_vm11 = vcmp.ge.f32.partialorder %v1346_v43, 0.0 }
  0xb6   : > { %v809_v32 = vsel %vm808_vm9, %v3039_v47, %v3049_v52  ;;  %v1348_v20 = vsel %vm1347_vm11, %v3039_v47, %v3049_v52 }
  0xb7   : > { %v810_v33 = vmul.f32 %v809_v32, %v807_v26  ;;  %v1318_v36 = vpop.permute.xlu1 %1317  ;;  %v1868_v58 = vpop.permute.xlu0 %1867  ;;  %v1349_v62 = vmul.f32 %v1348_v20, %v1346_v43  ;;  %v209_v32 = vld [vmem:[%s3383_s1 + $0x8] sm:$0xff] }
  0xb8   : > { %v1320_v44 = vadd.f32 %v1318_v36, %v1315_v21  ;;  %v1870_v0 = vadd.f32 %v1868_v58, %v1865_v56  ;;  %v208_v36 = vld [vmem:[%s3383_s1] sm:$0xff] }
  0xb9   : > { %v811_v46 = vadd.f32 %v810_v33, %v798_v41  ;;  %v3140_v33 = vand.u32 4294901760, %v209_v32  ;;  %v3145_v40 = vand.u32 4294901760, %v208_v36 }
  0xba   : > { %vm1321_vm10 = vcmp.ge.f32.partialorder %v1320_v44, 0.0  ;;  %vm1871_vm14 = vcmp.ge.f32.partialorder %v1870_v0, 0.0 }
  0xbb   : > { %v1322_v25 = vsel %vm1321_vm10, %v3034_v42, %v3036_v45  ;;  %v812_v49 = vsel %vm280_vm6, %v811_v46, -inf  ;;  %v1872_v9 = vsel %vm1871_vm14, %v3027_v37, %v3029_v38  ;;  %v3148_v41 = vsub.f32 %v209_v32, %v3140_v33 }
  0xbc   : > { %v1323_v51 = vmul.f32 %v1322_v25, %v1320_v44  ;;  %v1331_v53 = vpop.permute.xlu1 %1330  ;;  %813 = vmax.xlane.f32.xlu0 %v812_v49  ;;  %v1873_v12 = vmul.f32 %v1872_v9, %v1870_v0 }
  0xbd   : > { %v1333_v54 = vadd.f32 %v1331_v53, %v1328_v24  ;;  %v407_v24 = vand.u32 4294901760, %v3148_v41  ;;  %v2900_v53 = vmov 0.0  }
  0xbe   : > { %v1324_v59 = vadd.f32 %v1323_v51, %v1311_v48  ;;  %2590 = vmatprep.subr.mxu1 %v2900_v53  ;;  %2583 = vmatprep.subr.mxu0 %v2900_v53 }
  0xbf   : > { %vm1334_vm12 = vcmp.ge.f32.partialorder %v1333_v54, 0.0  ;;  %v408_v25 = vsub.f32 %v3148_v41, %v407_v24  ;;  %2584 = vmatpush3.msra.mxu0 %v3140_v33  ;;  %2594 = vmatprep.mubr.msk.f32.mxu1 %vm2902_vm4, %v2900_v53 }
  0xc0   : > { %v1335_v60 = vsel %vm1334_vm12, %v3027_v37, %v3029_v38  ;;  %2585 = vmatprep.subr.mxu0 %v2900_v53  ;;  %2587 = vmatprep.mubr.msk.f32.mxu0 %vm2902_vm4, %v2900_v53 }
  0xc1   : > { %v1336_v61 = vmul.f32 %v1335_v60, %v1333_v54  ;;  %v1842_v63 = vpop.permute.xlu1 %1841  ;;  %v409_v49 = vand.u32 4294901760, %v408_v25  ;;  %2586 = vmatpush3.msra.mxu0 %v3145_v40 }
  0xc2   : > { %v1844_v1 = vadd.f32 %v1842_v63, %v1839_v57  ;;  %2597 = vmatprep.subr.mxu0 %v2900_v53 }
  0xc3   : > { %v1337_v3 = vadd.f32 %v1336_v61, %v1324_v59  ;;  %2591 = vmatpush3.msra.mxu1 %v409_v49 }
  0xc4   : > { %vm1845_vm13 = vcmp.ge.f32.partialorder %v1844_v1, 0.0  ;;  %2592 = vmatprep.subr.mxu1 %v2900_v53 }
  0xc5   : > { %v1846_v34 = vsel %vm1845_vm13, %v3007_v28, %v3009_v29  ;;  %v1350_v4 = vadd.f32 %v1349_v62, %v1337_v3 }
  0xc6   : > { %v1847_v5 = vmul.f32 %v1846_v34, %v1844_v1  ;;  %v1855_v6 = vpop.permute.xlu1 %1854 }
  0xc7   : > { %v1857_v7 = vadd.f32 %v1855_v6, %v1852_v50  ;;  %v1351_v8 = vsel %vm280_vm6, %v1350_v4, -inf }
  0xc8   : > { %1352 = vmax.xlane.f32.xlu0 %v1351_v8  ;;  %v1848_v10 = vadd.f32 %v1847_v5, %v3031_v39 }
  0xc9   : > { %vm1858_vm15 = vcmp.ge.f32.partialorder %v1857_v7, 0.0 }
  0xca   : > { %v1859_v28 = vsel %vm1858_vm15, %v3034_v42, %v3036_v45 }
  0xcb   : > { %v1860_v29 = vmul.f32 %v1859_v28, %v1857_v7  ;;  %v1881_v13 = vpop.permute.xlu1 %1880 }
  0xcc   : > { %v1883_v14 = vadd.f32 %v1881_v13, %v1878_v35 }
  0xcd   : > { %v1861_v15 = vadd.f32 %v1860_v29, %v1848_v10 }
  0xce   : > { %vm1884_vm0 = vcmp.ge.f32.partialorder %v1883_v14, 0.0 }
  0xcf   : > { %v1885_v16 = vsel %vm1884_vm0, %v3039_v47, %v3049_v52  ;;  %v1874_v37 = vadd.f32 %v1873_v12, %v1861_v15 }
  0xd0   : > { %v1886_v38 = vmul.f32 %v1885_v16, %v1883_v14 }
  0xd2   : > { %v3124_v18 = vadd.f32 %v1886_v38, %v1874_v37 }
  0xd4   : > { %v1888_v39 = vsel %vm280_vm6, %v3124_v18, -inf }
  0xd5   : > { %1889 = vmax.xlane.f32.xlu1 %v1888_v39 }
 0x13a   : > { %v283_v55 = vpop.xlane.xlu1 %282 }
 0x13b   : > { %vm284_vm1 = vcmp.gt.f32.partialorder %v283_v55, -1e+20 }
 0x13c   : > { %v285_v42 = vsel %vm284_vm1, %v283_v55, 0.0 }
 0x13d   : > { %v286_v45 = vsub.f32 %v3071_v11, %v285_v42 }
 0x13f   : > { %v287_v2 = vmul.f32 1.442695, %v286_v45 }
 0x141   : > { %2824 = vpow2.f32 %v287_v2 }
 0x145   : > { %v814_v17 = vpop.xlane.xlu0 %813 }
 0x146   : > { %vm815_vm2 = vcmp.gt.f32.partialorder %v814_v17, -1e+20 }
 0x147   : > { %v816_v19 = vsel %vm815_vm2, %v814_v17, 0.0 }
 0x148   : > { %v817_v22 = vsub.f32 %v811_v46, %v816_v19  ;;  %v3156_v46 = vsub.f32 %v208_v36, %v3145_v40 }
 0x14a   : > { %v818_v47 = vmul.f32 1.442695, %v817_v22  ;;  %v414_v48 = vand.u32 4294901760, %v3156_v46 }
 0x14c   : > { %2826 = vpow2.f32 %v818_v47  ;;  %v415_v51 = vsub.f32 %v3156_v46, %v414_v48 }
 0x14e   : > { %v3129_v52 = vpop.eup %2824  ;;  %v416_v54 = vand.u32 4294901760, %v415_v51 }
 0x14f   : > { %v289_v23 = vsel %vm280_vm6, %v3129_v52, 0.0 }
 0x150   : > { %290 = vadd.xlane.f32.xlu0 %v289_v23  ;;  %2593 = vmatpush3.msra.mxu1 %v416_v54 }
 0x151   : > { %v1353_v26 = vpop.xlane.xlu0 %1352  ;;  %2604 = vmatprep.subr.mxu1 %v2900_v53 }
 0x152   : > { %vm1354_vm3 = vcmp.gt.f32.partialorder %v1353_v26, -1e+20 }
 0x153   : > { %v1355_v27 = vsel %vm1354_vm3, %v1353_v26, 0.0 }
 0x154   : > { %v1356_v21 = vsub.f32 %v1350_v4, %v1355_v27 }
 0x156   : > { %v1357_v30 = vmul.f32 1.442695, %v1356_v21 }
 0x158   : > { %2828 = vpow2.f32 %v1357_v30 }
 0x159   : > { %v3133_v11 = vpop.eup %2826 }
 0x15a   : > { %v820_v31 = vsel %vm280_vm6, %v3133_v11, 0.0 }
 0x15b   : > { %821 = vadd.xlane.f32.xlu1 %v820_v31 }
 0x15e   : > { %v1890_v56 = vpop.xlane.xlu1 %1889 }
 0x15f   : > { %vm1891_vm5 = vcmp.gt.f32.partialorder %v1890_v56, -1e+20 }
 0x160   : > { %v1892_v20 = vsel %vm1891_vm5, %v1890_v56, 0.0 }
 0x161   : > { %v1893_v57 = vsub.f32 %v3124_v18, %v1892_v20 }
 0x163   : > { %v1894_v58 = vmul.f32 1.442695, %v1893_v57 }
 0x165   : > { %v3150_v43 = vpop.eup %2828  ;;  %2830 = vpow2.f32 %v1894_v58 }
 0x166   : > { %v1359_v44 = vsel %vm280_vm6, %v3150_v43, 0.0 }
 0x167   : > { %1360 = vadd.xlane.f32.xlu0 %v1359_v44 }
 0x16c   : > { %829 = vrot.lane.b32.xlu1 %v208_v36, %s2901_s10 }
 0x170   : > { %1368 = vrot.lane.b32.xlu1 %v209_v32, %s2903_s11 }
 0x172   : > { %v3178_v59 = vpop.eup %2830 }
 0x173   : > { %v1896_v60 = vsel %vm280_vm6, %v3178_v59, 0.0 }
 0x17d   : > { %831 = vrot.lane.b32.xlu0 %v209_v32, %s2901_s10 }
 0x181   : > { %1366 = vrot.lane.b32.xlu0 %v208_v36, %s2903_s11 }
 0x185   : > { %1903 = vrot.lane.b32.xlu0 %v208_v36, %s2904_s12 }
 0x194   : > { %1897 = vadd.xlane.f32.xlu1 %v1896_v60 }
 0x1a5   : > { %1905 = vrot.lane.b32.xlu1 %v209_v32, %s2904_s12 }
 0x1d9   : > { %v291_v61 = vpop.xlane.xlu0 %290 }
 0x1da   : > { %vm292_vm7 = vcmp.gt.f32.partialorder %v291_v61, 0.0 }
 0x1db   : > { %v293_v62 = vsel %vm292_vm7, %v291_v61, 1.0 }
 0x1dc   : > { %2832 = vrcp.f32 %v293_v62 }
 0x1e4   : > { %v822_v63 = vpop.xlane.xlu1 %821 }
 0x1e5   : > { %vm823_vm8 = vcmp.gt.f32.partialorder %v822_v63, 0.0 }
 0x1e6   : > { %v824_v0 = vsel %vm823_vm8, %v822_v63, 1.0 }
 0x1e7   : > { %2834 = vrcp.f32 %v824_v0 }
 0x1e8   : > { %v830_v34 = vpop.permute.xlu1 %829 }
 0x1e9   : > { %v2833_v1 = vpop.eup %2832  ;;  %v3184_v6 = vand.u32 4294901760, %v830_v34 }
 0x1ea   : > { %v295_v50 = vmul.f32 %v2833_v1, %v3129_v52 }
 0x1eb   : > { %v3193_v28 = vsub.f32 %v830_v34, %v3184_v6 }
 0x1ec   : > { %v297_v3 = vsel %vm280_vm6, %v295_v50, 0  ;;  %v1369_v45 = vpop.permute.xlu1 %1368 }
 0x1ed   : > { %v366_v4 = vand.u32 4294901760, %v297_v3  ;;  %v953_v37 = vand.u32 4294901760, %v3193_v28  ;;  %v3232_v47 = vand.u32 4294901760, %v1369_v45 }
 0x1ef   : > { %v367_v5 = vsub.f32 %v297_v3, %v366_v4  ;;  %2595 = vmatmul.mubr.f32.vlgmr.msra.gmra.mxu1 %v366_v4  ;;  %v954_v42 = vsub.f32 %v3193_v28, %v953_v37  ;;  %v3243_v30 = vsub.f32 %v1369_v45, %v3232_v47 }
 0x1f0   : > { %2605 = vmatpush3.msra.mxu1 %v3140_v33  ;;  %v1361_v7 = vpop.xlane.xlu0 %1360  ;;  %2608 = vmatprep.mubr.msk.f32.mxu1 %vm2902_vm4, %v2900_v53 }
 0x1f1   : > { %vm1362_vm9 = vcmp.gt.f32.partialorder %v1361_v7, 0.0  ;;  %2606 = vmatprep.subr.mxu1 %v2900_v53  ;;  %v368_v8 = vand.u32 4294901760, %v367_v5  ;;  %v955_v26 = vand.u32 4294901760, %v954_v42 }
 0x1f2   : > { %v1363_v9 = vsel %vm1362_vm9, %v1361_v7, 1.0  ;;  %2607 = vmatpush3.msra.mxu1 %v3145_v40 }
 0x1f3   : > { %2836 = vrcp.f32 %v1363_v9  ;;  %2609 = vmatmul.mubr.f32.vlgmr.msra.gmra.mxu1 %v368_v8  ;;  %2618 = vmatprep.subr.mxu1 %v2900_v53  ;;  %v369_v35 = vsub.f32 %v367_v5, %v368_v8 }
 0x1f4   : > { %v2835_v10 = vpop.eup %2834  ;;  %2619 = vmatpush3.msra.mxu1 %v3140_v33  ;;  %v832_v29 = vpop.permute.xlu0 %831  ;;  %2622 = vmatprep.mubr.msk.f32.mxu1 %vm2902_vm4, %v2900_v53  ;;  %v1483_v33 = vand.u32 4294901760, %v3243_v30 }
 0x1f5   : > { %v3198_v12 = vand.u32 4294901760, %v832_v29  ;;  %2620 = vmatprep.subr.mxu1 %v2900_v53  ;;  %v370_v13 = vand.u32 4294901760, %v369_v35  ;;  %v826_v14 = vmul.f32 %v2835_v10, %v3133_v11 }
 0x1f6   : > { %2621 = vmatpush3.msra.mxu1 %v3145_v40 }
 0x1f7   : > { %v3204_v15 = vsub.f32 %v832_v29, %v3198_v12  ;;  %2588 = vmatmul.mubr.f32.vlgmr.msra.gmra.mxu0 %v370_v13  ;;  %2623 = vmatmul.mubr.f32.vlgmr.msra.gmra.mxu1 %v366_v4  ;;  %v836_v16 = vsel %vm280_vm6, %v826_v14, 0 }
 0x1f8   : > { %2598 = vmatpush3.msra.mxu0 %v3148_v41  ;;  %2601 = vmatprep.mubr.msk.f32.mxu0 %vm2902_vm4, %v2900_v53  ;;  %v3211_v38 = vand.u32 4294901760, %v836_v16  ;;  %v1367_v2 = vpop.permute.xlu0 %1366  ;;  %v1484_v41 = vsub.f32 %v3243_v30, %v1483_v33 }
 0x1f9   : > { %v946_v18 = vand.u32 4294901760, %v3204_v15  ;;  %2599 = vmatprep.subr.mxu0 %v2900_v53  ;;  %2632 = vmatprep.subr.mxu1 %v2900_v53  ;;  %v3235_v52 = vand.u32 4294901760, %v1367_v2 }
 0x1fa   : > { %2600 = vmatpush3.msra.mxu0 %v3156_v46  ;;  %2636 = vmatprep.mubr.msk.f32.mxu1 %vm2902_vm4, %v2900_v53  ;;  %v906_v39 = vsub.f32 %v836_v16, %v3211_v38 }
 0x1fb   : > { %v947_v55 = vsub.f32 %v3204_v15, %v946_v18  ;;  %2611 = vmatprep.subr.mxu0 %v2900_v53  ;;  %2602 = vmatmul.mubr.f32.vlgmr.msra.gmra.mxu0 %v367_v5  ;;  %v3248_v11 = vsub.f32 %v1367_v2, %v3235_v52 }
 0x1fc   : > { %2612 = vmatpush3.msra.mxu0 %v407_v24  ;;  %2615 = vmatprep.mubr.msk.f32.mxu0 %vm2902_vm4, %v2900_v53  ;;  %v907_v17 = vand.u32 4294901760, %v906_v39  ;;  %v1485_v24 = vand.u32 4294901760, %v1484_v41  ;;  %v1904_v49 = vpop.permute.xlu0 %1903 }
 0x1fd   : > { %v948_v19 = vand.u32 4294901760, %v947_v55  ;;  %2613 = vmatprep.subr.mxu0 %v2900_v53  ;;  %v1490_v36 = vand.u32 4294901760, %v3248_v11  ;;  %v1944_v51 = vand.u32 4294901760, %v1904_v49 }
 0x1fe   : > { %2614 = vmatpush3.msra.mxu0 %v414_v48  ;;  %v908_v22 = vsub.f32 %v906_v39, %v907_v17 }
 0x1ff   : > { %2625 = vmatprep.subr.mxu0 %v2900_v53  ;;  %2616 = vmatmul.mubr.f32.vlgmr.msra.gmra.mxu0 %v366_v4  ;;  %v2026_v56 = vsub.f32 %v1904_v49, %v1944_v51 }
 0x200   : > { %v2837_v23 = vpop.eup %2836  ;;  %2626 = vmatpush3.msra.mxu0 %v3198_v12  ;;  %2633 = vmatpush3.msra.mxu1 %v948_v19  ;;  %v909_v27 = vand.u32 4294901760, %v908_v22 }
 0x201   : > { %2627 = vmatprep.subr.mxu0 %v2900_v53  ;;  %2634 = vmatprep.subr.mxu1 %v2900_v53  ;;  %v1365_v21 = vmul.f32 %v2837_v23, %v3150_v43  ;;  %v1491_v43 = vsub.f32 %v3248_v11, %v1490_v36  ;;  %v2027_v60 = vand.u32 4294901760, %v2026_v56 }
 0x202   : > { %2628 = vmatpush3.msra.mxu0 %v3184_v6  ;;  %2635 = vmatpush3.msra.mxu1 %v955_v26 }
 0x203   : > { %2629 = vmatprep.mubr.msk.f32.mxu0 %vm2902_vm4, %v2900_v53  ;;  %2637 = vmatmul.mubr.f32.vlgmr.msra.gmra.mxu1 %v3211_v38  ;;  %v1373_v31 = vsel %vm280_vm6, %v1365_v21, 0  ;;  %v1492_v46 = vand.u32 4294901760, %v1491_v43  ;;  %v2028_v63 = vsub.f32 %v2026_v56, %v2027_v60 }
 0x204   : > { %2639 = vmatprep.subr.mxu0 %v2900_v53  ;;  %2646 = vmatprep.subr.mxu1 %v2900_v53  ;;  %v3254_v32 = vand.u32 4294901760, %v1373_v31 }
 0x205   : > { %2630 = vmatmul.mubr.f32.vlgmr.msra.gmra.mxu0 %v909_v27  ;;  %2647 = vmatpush3.msra.mxu1 %v3198_v12  ;;  %v2029_v50 = vand.u32 4294901760, %v2028_v63 }
 0x206   : > { %2640 = vmatpush3.msra.mxu0 %v3204_v15  ;;  %2648 = vmatprep.subr.mxu1 %v2900_v53  ;;  %v1443_v40 = vsub.f32 %v1373_v31, %v3254_v32 }
 0x207   : > { %2641 = vmatprep.subr.mxu0 %v2900_v53  ;;  %2649 = vmatpush3.msra.mxu1 %v3184_v6 }
 0x208   : > { %2642 = vmatpush3.msra.mxu0 %v3193_v28  ;;  %2650 = vmatprep.mubr.msk.f32.mxu1 %vm2902_vm4, %v2900_v53  ;;  %v1444_v44 = vand.u32 4294901760, %v1443_v40 }
 0x209   : > { %2643 = vmatprep.mubr.msk.f32.mxu0 %vm2902_vm4, %v2900_v53  ;;  %2651 = vmatmul.mubr.f32.vlgmr.msra.gmra.mxu1 %v907_v17 }
 0x20a   : > { %2653 = vmatprep.subr.mxu0 %v2900_v53  ;;  %2660 = vmatprep.subr.mxu1 %v2900_v53  ;;  %v1445_v25 = vsub.f32 %v1443_v40, %v1444_v44 }
 0x20b   : > { %2644 = vmatmul.mubr.f32.vlgmr.msra.gmra.mxu0 %v906_v39  ;;  %2661 = vmatpush3.msra.mxu1 %v3198_v12 }
 0x20c   : > { %2654 = vmatpush3.msra.mxu0 %v946_v18  ;;  %2662 = vmatprep.subr.mxu1 %v2900_v53  ;;  %v1446_v48 = vand.u32 4294901760, %v1445_v25 }
 0x20d   : > { %2655 = vmatprep.subr.mxu0 %v2900_v53  ;;  %2663 = vmatpush3.msra.mxu1 %v3184_v6 }
 0x20e   : > { %2656 = vmatpush3.msra.mxu0 %v953_v37  ;;  %2664 = vmatprep.mubr.msk.f32.mxu1 %vm2902_vm4, %v2900_v53 }
 0x20f   : > { %2657 = vmatprep.mubr.msk.f32.mxu0 %vm2902_vm4, %v2900_v53  ;;  %2665 = vmatmul.mubr.f32.vlgmr.msra.gmra.mxu1 %v3211_v38 }
 0x210   : > { %2667 = vmatprep.subr.mxu0 %v2900_v53  ;;  %2674 = vmatprep.subr.mxu1 %v2900_v53 }
 0x211   : > { %2658 = vmatmul.mubr.f32.vlgmr.msra.gmra.mxu0 %v3211_v38  ;;  %2675 = vmatpush3.msra.mxu1 %v1485_v24 }
 0x212   : > { %2668 = vmatpush3.msra.mxu0 %v3232_v47  ;;  %2676 = vmatprep.subr.mxu1 %v2900_v53 }
 0x213   : > { %2669 = vmatprep.subr.mxu0 %v2900_v53  ;;  %2677 = vmatpush3.msra.mxu1 %v1492_v46 }
 0x214   : > { %2670 = vmatpush3.msra.mxu0 %v3235_v52  ;;  %2678 = vmatprep.mubr.msk.f32.mxu1 %vm2902_vm4, %v2900_v53 }
 0x215   : > { %2671 = vmatprep.mubr.msk.f32.mxu0 %vm2902_vm4, %v2900_v53  ;;  %2679 = vmatmul.mubr.f32.vlgmr.msra.gmra.mxu1 %v3254_v32 }
 0x216   : > { %2681 = vmatprep.subr.mxu0 %v2900_v53  ;;  %2688 = vmatprep.subr.mxu1 %v2900_v53 }
 0x217   : > { %2672 = vmatmul.mubr.f32.vlgmr.msra.gmra.mxu0 %v1446_v48  ;;  %2689 = vmatpush3.msra.mxu1 %v3232_v47 }
 0x218   : > { %2682 = vmatpush3.msra.mxu0 %v3243_v30  ;;  %2690 = vmatprep.subr.mxu1 %v2900_v53 }
 0x219   : > { %2683 = vmatprep.subr.mxu0 %v2900_v53  ;;  %2691 = vmatpush3.msra.mxu1 %v3235_v52 }
 0x21a   : > { %2684 = vmatpush3.msra.mxu0 %v3248_v11  ;;  %2692 = vmatprep.mubr.msk.f32.mxu1 %vm2902_vm4, %v2900_v53 }
 0x21b   : > { %2685 = vmatprep.mubr.msk.f32.mxu0 %vm2902_vm4, %v2900_v53  ;;  %2693 = vmatmul.mubr.f32.vlgmr.msra.gmra.mxu1 %v1444_v44 }
 0x21c   : > { %2695 = vmatprep.subr.mxu0 %v2900_v53  ;;  %2702 = vmatprep.subr.mxu1 %v2900_v53 }
 0x21d   : > { %2686 = vmatmul.mubr.f32.vlgmr.msra.gmra.mxu0 %v1443_v40  ;;  %2703 = vmatpush3.msra.mxu1 %v3232_v47  ;;  %v1898_v54 = vpop.xlane.xlu1 %1897 }
 0x21e   : > { %2696 = vmatpush3.msra.mxu0 %v1483_v33  ;;  %2704 = vmatprep.subr.mxu1 %v2900_v53  ;;  %vm1899_vm10 = vcmp.gt.f32.partialorder %v1898_v54, 0.0 }
 0x21f   : > { %2697 = vmatprep.subr.mxu0 %v2900_v53  ;;  %2705 = vmatpush3.msra.mxu1 %v3235_v52  ;;  %v1900_v20 = vsel %vm1899_vm10, %v1898_v54, 1.0 }
 0x220   : > { %2706 = vmatprep.mubr.msk.f32.mxu1 %vm2902_vm4, %v2900_v53  ;;  %2698 = vmatpush3.msra.mxu0 %v1490_v36  ;;  %2838 = vrcp.f32 %v1900_v20 }
 0x221   : > { %2699 = vmatprep.mubr.msk.f32.mxu0 %vm2902_vm4, %v2900_v53  ;;  %2707 = vmatmul.mubr.f32.vlgmr.msra.gmra.mxu1 %v3254_v32  ;;  %v1906_v57 = vpop.permute.xlu1 %1905 }
 0x222   : > { %2700 = vmatmul.mubr.f32.vlgmr.msra.gmra.mxu0 %v3254_v32  ;;  %v1941_v58 = vand.u32 4294901760, %v1906_v57  ;;  %2716 = vmatprep.subr.mxu1 %v2900_v53 }
 0x223   : > { %2709 = vmatprep.subr.mxu0 %v2900_v53  ;;  %2720 = vmatprep.mubr.msk.f32.mxu1 %vm2902_vm4, %v2900_v53 }
 0x224   : > { %v2019_v61 = vsub.f32 %v1906_v57, %v1941_v58  ;;  %2710 = vmatpush3.msra.mxu0 %v1941_v58  ;;  %2713 = vmatprep.mubr.msk.f32.mxu0 %vm2902_vm4, %v2900_v53 }
 0x225   : > { %2711 = vmatprep.subr.mxu0 %v2900_v53 }
 0x226   : > { %v2020_v62 = vand.u32 4294901760, %v2019_v61  ;;  %2712 = vmatpush3.msra.mxu0 %v1944_v51 }
 0x227   : > { %2723 = vmatprep.subr.mxu0 %v2900_v53 }
 0x228   : > { %v2021_v0 = vsub.f32 %v2019_v61, %v2020_v62 }
 0x22a   : > { %v2022_v1 = vand.u32 4294901760, %v2021_v0 }
 0x22c   : > { %2717 = vmatpush3.msra.mxu1 %v2022_v1 }
 0x22d   : > { %v2839_v3 = vpop.eup %2838  ;;  %2718 = vmatprep.subr.mxu1 %v2900_v53 }
 0x22e   : > { %2719 = vmatpush3.msra.mxu1 %v2029_v50  ;;  %v1902_v34 = vmul.f32 %v2839_v3, %v3178_v59 }
 0x22f   : > { %2730 = vmatprep.subr.mxu1 %v2900_v53 }
 0x230   : > { %v1910_v4 = vsel %vm280_vm6, %v1902_v34, 0  ;;  %vm758_vm6 = vcmask 31744  }
 0x231   : > { %v1979_v5 = vand.u32 4294901760, %v1910_v4 }
 0x233   : > { %v1980_v6 = vsub.f32 %v1910_v4, %v1979_v5  ;;  %2721 = vmatmul.mubr.f32.vlgmr.msra.gmra.mxu1 %v1979_v5 }
 0x234   : > { %2731 = vmatpush3.msra.mxu1 %v1941_v58  ;;  %2734 = vmatprep.mubr.msk.f32.mxu1 %vm2902_vm4, %v2900_v53 }
 0x235   : > { %2732 = vmatprep.subr.mxu1 %v2900_v53  ;;  %v1981_v7 = vand.u32 4294901760, %v1980_v6 }
 0x236   : > { %2733 = vmatpush3.msra.mxu1 %v1944_v51 }
 0x237   : > { %2744 = vmatprep.subr.mxu1 %v2900_v53  ;;  %2735 = vmatmul.mubr.f32.vlgmr.msra.gmra.mxu1 %v1981_v7  ;;  %v1982_v8 = vsub.f32 %v1980_v6, %v1981_v7 }
 0x238   : > { %2745 = vmatpush3.msra.mxu1 %v1941_v58  ;;  %2748 = vmatprep.mubr.msk.f32.mxu1 %vm2902_vm4, %v2900_v53 }
 0x239   : > { %2746 = vmatprep.subr.mxu1 %v2900_v53  ;;  %v1983_v59 = vand.u32 4294901760, %v1982_v8 }
 0x23a   : > { %2747 = vmatpush3.msra.mxu1 %v1944_v51 }
 0x23b   : > { %2714 = vmatmul.mubr.f32.vlgmr.msra.gmra.mxu0 %v1983_v59  ;;  %2749 = vmatmul.mubr.f32.vlgmr.msra.gmra.mxu1 %v1979_v5 }
 0x23c   : > { %2724 = vmatpush3.msra.mxu0 %v2019_v61  ;;  %2727 = vmatprep.mubr.msk.f32.mxu0 %vm2902_vm4, %v2900_v53 }
 0x23d   : > { %2725 = vmatprep.subr.mxu0 %v2900_v53 }
 0x23e   : > { %2726 = vmatpush3.msra.mxu0 %v2026_v56 }
 0x23f   : > { %2737 = vmatprep.subr.mxu0 %v2900_v53  ;;  %2728 = vmatmul.mubr.f32.vlgmr.msra.gmra.mxu0 %v1980_v6 }
 0x240   : > { %2738 = vmatpush3.msra.mxu0 %v2020_v62  ;;  %2741 = vmatprep.mubr.msk.f32.mxu0 %vm2902_vm4, %v2900_v53 }
 0x241   : > { %2739 = vmatprep.subr.mxu0 %v2900_v53 }
 0x242   : > { %2740 = vmatpush3.msra.mxu0 %v2027_v60 }
 0x243   : > { %2742 = vmatmul.mubr.f32.vlgmr.msra.gmra.mxu0 %v1979_v5 }
 0x2af   : > { %v453_v9 = vpop.f32.mrf.mxu1 }
 0x2b1   : > { %v2596_v35 = vpop.f32.mrf.mxu1 }
 0x2b3   : > { %v604_v10 = vpop.f32.mrf.mxu1 }
 0x2b5   : > { %v2610_v28 = vpop.f32.mrf.mxu1 }
 0x2b7   : > { %v372_v29 = vpop.f32.mrf.mxu0  ;;  %v754_v12 = vpop.f32.mrf.mxu1 }
 0x2b8   : > { %v454_v15 = vadd.f32 %v453_v9, %v372_v29 }
 0x2b9   : > { %v2589_v13 = vpop.f32.mrf.mxu0  ;;  %v2624_v14 = vpop.f32.mrf.mxu1 }
 0x2bb   : > { %v529_v16 = vpop.f32.mrf.mxu0 }
 0x2bc   : > { %v530_v37 = vadd.f32 %v529_v16, %v454_v15 }
 0x2bd   : > { %v2603_v38 = vpop.f32.mrf.mxu0 }
 0x2be   : > { %v605_v18 = vadd.f32 %v604_v10, %v530_v37 }
 0x2bf   : > { %v681_v39 = vpop.f32.mrf.mxu0 }
 0x2c0   : > { %v682_v55 = vadd.f32 %v681_v39, %v605_v18 }
 0x2c1   : > { %v2617_v53 = vpop.f32.mrf.mxu0 }
 0x2c2   : > { %v755_v42 = vadd.f32 %v754_v12, %v682_v55 }
 0x2c3   : > { %v992_v45 = vpop.f32.mrf.mxu1 }
 0x2c4   : > { %759 = vst.msk [vmem:[%s3351_s17] sm:$0xff] %vm758_vm6, %v755_v42 }
 0x2c5   : > { %v911_v2 = vpop.f32.mrf.mxu0  ;;  %v2638_v17 = vpop.f32.mrf.mxu1 }
 0x2c6   : > { %v993_v47 = vadd.f32 %v992_v45, %v911_v2 }
 0x2c7   : > { %v2631_v19 = vpop.f32.mrf.mxu0 }
 0x2c9   : > { %v1143_v22 = vpop.f32.mrf.mxu1 }
 0x2cb   : > { %v1068_v52 = vpop.f32.mrf.mxu0  ;;  %v2652_v23 = vpop.f32.mrf.mxu1  ;;  %v2416_v29 = vld [vmem:[%s3351_s17] sm:$0xff] (%p2955_p4) }
 0x2cc   : > { %v1069_v26 = vadd.f32 %v1068_v52, %v993_v47  ;;  %2417 = vst [vmem:[%s2381_s21] sm:$0xff] (%p2955_p4), %v2416_v29 }
 0x2cd   : > { %v2645_v27 = vpop.f32.mrf.mxu0 }
 0x2ce   : > { %v1144_v21 = vadd.f32 %v1143_v22, %v1069_v26 }
 0x2cf   : > { %v1293_v30 = vpop.f32.mrf.mxu1 }
 0x2d1   : > { %v1220_v11 = vpop.f32.mrf.mxu0  ;;  %v2666_v31 = vpop.f32.mrf.mxu1 }
 0x2d2   : > { %v1221_v32 = vadd.f32 %v1220_v11, %v1144_v21 }
 0x2d3   : > { %v2659_v33 = vpop.f32.mrf.mxu0 }
 0x2d4   : > { %v1294_v36 = vadd.f32 %v1293_v30, %v1221_v32 }
 0x2d5   : > { %v1529_v40 = vpop.f32.mrf.mxu1 }
 0x2d6   : > { %2504 = vst.msk [vmem:[%s3351_s17 + $0x8] sm:$0xff] %vm758_vm6, %v1294_v36 }
 0x2d7   : > { %v1448_v41 = vpop.f32.mrf.mxu0  ;;  %v2680_v43 = vpop.f32.mrf.mxu1 }
 0x2d8   : > { %v1530_v46 = vadd.f32 %v1529_v40, %v1448_v41 }
 0x2d9   : > { %v2673_v44 = vpop.f32.mrf.mxu0 }
 0x2db   : > { %v1680_v24 = vpop.f32.mrf.mxu1 }
 0x2dd   : > { %v1605_v25 = vpop.f32.mrf.mxu0  ;;  %v2694_v48 = vpop.f32.mrf.mxu1  ;;  %v2418_v12 = vld [vmem:[%s3351_s17 + $0x8] sm:$0xff] (%p2955_p4) }
 0x2de   : > { %v1606_v49 = vadd.f32 %v1605_v25, %v1530_v46  ;;  %2419 = vst [vmem:[%s2381_s21 + $0x10] sm:$0xff] (%p2955_p4), %v2418_v12 }
 0x2df   : > { %v2687_v51 = vpop.f32.mrf.mxu0 }
 0x2e0   : > { %v1681_v54 = vadd.f32 %v1680_v24, %v1606_v49 }
 0x2e1   : > { %v1830_v56 = vpop.f32.mrf.mxu1 }
 0x2e2   : > { %v1757_v20 = vpop.f32.mrf.mxu0 }
 0x2e3   : > { %v1758_v57 = vadd.f32 %v1757_v20, %v1681_v54  ;;  %v2708_v58 = vpop.f32.mrf.mxu1 }
 0x2e4   : > { %v2701_v60 = vpop.f32.mrf.mxu0 }
 0x2e5   : > { %v1831_v61 = vadd.f32 %v1830_v56, %v1758_v57 }
 0x2e7   : > { %2505 = vst.msk [vmem:[%s3351_s17 + $0x10] sm:$0xff] %vm758_vm6, %v1831_v61 }
 0x2ee   : > { %v2420_v13 = vld [vmem:[%s3351_s17 + $0x10] sm:$0xff] (%p2955_p4) }
 0x2ef   : > { %2421 = vst [vmem:[%s2381_s21 + $0x20] sm:$0xff] (%p2955_p4), %v2420_v13 }
 0x2f3   : > { %v2066_v62 = vpop.f32.mrf.mxu1 }
 0x2f5   : > { %v2722_v63 = vpop.f32.mrf.mxu1 }
 0x2f7   : > { %v2217_v0 = vpop.f32.mrf.mxu1 }
 0x2f9   : > { %v2736_v1 = vpop.f32.mrf.mxu1 }
 0x2fb   : > { %v1985_v50 = vpop.f32.mrf.mxu0  ;;  %v2367_v3 = vpop.f32.mrf.mxu1 }
 0x2fc   : > { %v2067_v5 = vadd.f32 %v2066_v62, %v1985_v50 }
 0x2fd   : > { %v2715_v34 = vpop.f32.mrf.mxu0  ;;  %v2750_v4 = vpop.f32.mrf.mxu1 }
 0x2ff   : > { %v2142_v6 = vpop.f32.mrf.mxu0 }
 0x300   : > { %v2143_v7 = vadd.f32 %v2142_v6, %v2067_v5 }
 0x301   : > { %v2729_v8 = vpop.f32.mrf.mxu0 }
 0x302   : > { %v2218_v59 = vadd.f32 %v2217_v0, %v2143_v7 }
 0x303   : > { %v2294_v9 = vpop.f32.mrf.mxu0 }
 0x304   : > { %v2295_v35 = vadd.f32 %v2294_v9, %v2218_v59  ;;  %2379 = sbr.rel (!%p2955_p4) target bundleno = 785 (0x311), region = 44 }
 0x305   : > { %v2743_v10 = vpop.f32.mrf.mxu0 }
 0x306   : > { %v2368_v28 = vadd.f32 %v2367_v3, %v2295_v35 }
 0x308   : > { %2506 = vst.msk [vmem:[%s3351_s17 + $0x18] sm:$0xff] %vm758_vm6, %v2368_v28 }
 0x30f   : > { %v2422_v14 = vld [vmem:[%s3351_s17 + $0x18] sm:$0xff] }
 0x310   : > { %2423 = vst [vmem:[%s2381_s21 + $0x30] sm:$0xff] %v2422_v14 }
 0x311 PF: > { %p12_p4 = scmp.ge.s32.totalorder %s2945_s19, 4   ;;  %s3389_s15 = smov %s2877_s16 }
 0x312   : > { %s3390_s16 = smov %s2953_s22  ;;  %s3391_s17 = smov %s2945_s19 }
 0x313   :  { %14 = sbr.rel (!%p12_p4) target bundleno = 2 (0x2), region = 113 }
 0x318   :  { %2439 = vsyncpa [#allocation3], 1 }
 0x319   :  { %2441 = vsyncpa [#allocation3 + $0x1], 1 }

</bundles_post_ra>
